<compile_context>
chip_gen: v7x
topology: tpu7x:2x2x1
jax: 0.10.0
libtpu: 0.0.40
codegen_flags: <defaults>
</compile_context>

<pallas_src>
import functools

import jax
import jax.numpy as jnp
from jax.experimental import pallas as pl
from jax.experimental.pallas import tpu as pltpu

FEATURE_DIM = 128
BACKBONE_DIM = 512
BN_EPS = 1e-5
DEFAULT_TK_MAX = 4096  # K-tile cap (bf16 weight tile: 2*tk*512*2B = 8 MiB double-buffered)


def _round_up(x, m):
    return m * ((x + m - 1) // m)


def _choose_k_tiling(f_in, tk_max=DEFAULT_TK_MAX):
    """Pick a lane-aligned K tile that minimizes zero padding for this modality."""
    base = _round_up(f_in, 128)
    n_k = pl.cdiv(base, tk_max)
    tk = _round_up(pl.cdiv(f_in, n_k), 128)
    return tk, n_k, tk * n_k


# --------------------------------------------------------------------------- #
# Per-modality encoder kernel: grid = (K tiles,)                               #
# --------------------------------------------------------------------------- #
def _encoder_kernel(x_ref, wb_ref, wp_ref, gamma_ref, beta_ref, o_ref, acc_ref,
                    *, n_valid, n_k):
    """One K-tile step of a ModalityEncoder.

    x_ref:     (B_pad, TK)   bf16  flattened input tile
    wb_ref:    (TK, 512)     bf16  stand-in backbone weight tile
    wp_ref:    (512, D)      bf16  projection weight
    gamma_ref: (1, D)        f32   BatchNorm1d weight
    beta_ref:  (1, D)        f32   BatchNorm1d bias
    o_ref:     (B_pad, D)    f32   output features
    acc_ref:   (B_pad, 512)  f32   backbone accumulator (VMEM scratch)
    """
    k = pl.program_id(0)  # NOTE: only at kernel top level (never inside pl.when)

    @pl.when(k == 0)
    def _():
        acc_ref[...] = jnp.zeros_like(acc_ref)

    # Backbone Linear(F_in, 512), accumulated over K tiles on the MXU.
    acc_ref[...] += jnp.dot(x_ref[...], wb_ref[...],
                            preferred_element_type=jnp.float32)

    @pl.when(k == n_k - 1)
    def _():
        # Projection Linear(512, D). Bias omitted: a per-feature constant is
        # exactly cancelled by the training-mode BatchNorm mean subtraction.
        feat = acc_ref[...].astype(jnp.bfloat16)
        proj = jnp.dot(feat, wp_ref[...], preferred_element_type=jnp.float32)

        # BatchNorm1d (training mode): biased batch stats over the real rows.
        rows = jax.lax.broadcasted_iota(jnp.int32, proj.shape, 0)
        mask = (rows < n_valid).astype(jnp.float32)
        inv_n = 1.0 / n_valid
        mean = jnp.sum(proj * mask, axis=0, keepdims=True) * inv_n
        diff = (proj - mean) * mask
        var = jnp.sum(diff * diff, axis=0, keepdims=True) * inv_n

        scale = gamma_ref[...] * jax.lax.rsqrt(var + BN_EPS)
        shift = beta_ref[...] - mean * scale

        # normalize + affine as a single FMA, then ReLU.
        o_ref[...] = jnp.maximum(proj * scale + shift, 0.0)


def prepare_modality_params(wb, wp, gamma, beta, *, tk_max=DEFAULT_TK_MAX):
    """One-time weight reformatting (hoisted out of the per-step forward)."""
    f_in = wb.shape[0]
    tk, n_k, k_pad = _choose_k_tiling(f_in, tk_max)
    return {
        "wb": jnp.pad(wb.astype(jnp.bfloat16), ((0, k_pad - f_in), (0, 0))),
        "wp": wp.astype(jnp.bfloat16),
        "gamma": gamma.reshape(1, -1).astype(jnp.float32),
        "beta": beta.reshape(1, -1).astype(jnp.float32),
        "tk": tk,
        "n_k": n_k,
    }


def modality_encoder_forward(x, params):
    """ModalityEncoder.forward for one modality (own K tiling, no cross-padding)."""
    wb, wp = params["wb"], params["wp"]
    gamma, beta = params["gamma"], params["beta"]
    tk, n_k = params["tk"], params["n_k"]

    b = x.shape[0]
    b_pad = max(16, _round_up(b, 16))       # bf16 packs 16 rows / vreg
    k_pad = wb.shape[0]
    d = wp.shape[1]

    # torch.flatten(x, 1) equivalent; bf16 for the bandwidth-bound matmul stream.
    x_flat = x.reshape(b, -1).astype(jnp.bfloat16)
    x_p = jnp.pad(x_flat, ((0, b_pad - b), (0, k_pad - x_flat.shape[1])))

    kernel = functools.partial(_encoder_kernel, n_valid=b, n_k=n_k)

    flops = 2 * (b_pad * k_pad * BACKBONE_DIM + b_pad * BACKBONE_DIM * d)
    bytes_accessed = int((x_p.size + wb.size + wp.size) * 2
                         + (gamma.size + beta.size) * 4 + b_pad * d * 4)

    # Double-buffered input tiles + resident output/accumulator; cap at 48 MiB
    # so the same setting is safe on v7x (64 MiB VMEM) and v5e/v6e (128 MiB).
    vmem_needed = (2 * b_pad * tk * 2 + 2 * tk * BACKBONE_DIM * 2
                   + 2 * BACKBONE_DIM * d * 2 + 2 * b_pad * d * 4
                   + b_pad * BACKBONE_DIM * 4 + 4 * d * 4)
    vmem_limit = int(min(48 * 1024 * 1024,
                         max(32 * 1024 * 1024, vmem_needed + (4 << 20))))

    out = pl.pallas_call(
        kernel,
        out_shape=jax.ShapeDtypeStruct((b_pad, d), jnp.float32),
        grid_spec=pltpu.PrefetchScalarGridSpec(
            num_scalar_prefetch=0,
            grid=(n_k,),                                     # K reduction axis
            in_specs=[
                pl.BlockSpec((b_pad, tk), lambda k: (0, k)),
                pl.BlockSpec((tk, BACKBONE_DIM), lambda k: (k, 0)),
                pl.BlockSpec((BACKBONE_DIM, d), lambda k: (0, 0)),
                pl.BlockSpec((1, d), lambda k: (0, 0)),
                pl.BlockSpec((1, d), lambda k: (0, 0)),
            ],
            out_specs=pl.BlockSpec((b_pad, d), lambda k: (0, 0)),
            scratch_shapes=[pltpu.VMEM((b_pad, BACKBONE_DIM), jnp.float32)],
        ),
        compiler_params=pltpu.CompilerParams(
            dimension_semantics=("arbitrary",),
            vmem_limit_bytes=vmem_limit,
        ),
        cost_estimate=pl.CostEstimate(flops=flops, transcendentals=0,
                                      bytes_accessed=bytes_accessed),
    )(x_p, wb, wp, gamma, beta)
    return out[:b]


def encoder_forward(video_data, spectrogram_data, vision_params, audio_params):
    """Encoder.forward -> (video_features, audio_features)."""
    v_feat = modality_encoder_forward(video_data, vision_params)
    a_feat = modality_encoder_forward(spectrogram_data, audio_params)
    return v_feat, a_feat


# --------------------------------------------------------------------------- #
# InfoNCE loss kernel (ContrastiveLearning.info_nce_loss)                      #
# --------------------------------------------------------------------------- #
def _info_nce_kernel(f1_ref, f2t_ref, loss_ref, *, n_valid, inv_temp):
    # f1_ref: (Lp, D) bf16 ; f2t_ref: (D, Lp) bf16 (pre-transposed in wrapper).
    sim = jnp.dot(f1_ref[...], f2t_ref[...],
                  preferred_element_type=jnp.float32) * inv_temp

    lp = sim.shape[0]
    row = jax.lax.broadcasted_iota(jnp.int32, (lp, lp), 0)
    col = jax.lax.broadcasted_iota(jnp.int32, (lp, lp), 1)
    col_valid = (col < n_valid).astype(jnp.float32)
    pos = jnp.where(row == col, 1.0, 0.0) * col_valid

    # Replicates torch: sim * pos_mask + neg_mask * (-1000); padded columns get
    # -1e9 so they vanish from both logsumexps.
    masked = sim * pos + (1.0 - pos) * (-1000.0) + (1.0 - col_valid) * (-1e9)
    full = sim * col_valid + (1.0 - col_valid) * (-1e9)

    def lse(x):
        mx = jnp.max(x, axis=-1, keepdims=True)
        return mx + jnp.log(jnp.sum(jnp.exp(x - mx), axis=-1, keepdims=True))

    per_row = lse(masked) - lse(full)                              # (Lp, 1)
    row_valid = (jax.lax.broadcasted_iota(jnp.int32, (lp, 1), 0)
                 < n_valid).astype(jnp.float32)
    loss_ref[...] = -jnp.sum(per_row * row_valid, axis=0, keepdims=True) \
        * (1.0 / n_valid)


def info_nce_loss(features_1, features_2, temperature=0.07):
    l, d = features_1.shape
    lp = max(16, _round_up(l, 16))
    f1 = jnp.pad(features_1.astype(jnp.bfloat16), ((0, lp - l), (0, 0)))
    f2t = jnp.pad(features_2.astype(jnp.bfloat16).T, ((0, 0), (0, lp - l)))
    kernel = functools.partial(_info_nce_kernel, n_valid=l,
                               inv_temp=1.0 / temperature)
    loss = pl.pallas_call(
        kernel,
        out_shape=jax.ShapeDtypeStruct((1, 1), jnp.float32),
        grid=(1,),
        in_specs=[pl.BlockSpec((lp, d), lambda i: (0, 0)),
                  pl.BlockSpec((d, lp), lambda i: (0, 0))],
        out_specs=pl.BlockSpec((1, 1), lambda i: (0, 0)),
    )(f1, f2t)
    return loss[0, 0]


# --------------------------------------------------------------------------- #
# Module-level wrappers                                                        #
# --------------------------------------------------------------------------- #
def _init_modality_params(key, f_in, feature_dim=FEATURE_DIM):
    k1, k2 = jax.random.split(key, 2)
    wb = jax.random.normal(k1, (f_in, BACKBONE_DIM), jnp.float32) * (1.0 / jnp.sqrt(f_in))
    wp = jax.random.normal(k2, (BACKBONE_DIM, feature_dim), jnp.float32) \
        * (1.0 / jnp.sqrt(BACKBONE_DIM))
    gamma = jnp.ones((feature_dim,), jnp.float32)   # BatchNorm1d default init
    beta = jnp.zeros((feature_dim,), jnp.float32)
    # Prepared (padded / bf16 / tiled) ONCE here, not per forward call.
    return prepare_modality_params(wb, wp, gamma, beta)


def contrastive_forward(video_data, spectrogram_data, vision_params, audio_params,
                        temperature=0.07):
    """ContrastiveLearning.forward -> (video_features_mean, audio_features, loss)."""
    v_feat, a_feat = encoder_forward(video_data, spectrogram_data,
                                     vision_params, audio_params)
    length = a_feat.shape[0]
    assert v_feat.shape[0] == 3 * length, "video batch must be 3x audio batch"
    v_mean = v_feat.reshape(length, 3, FEATURE_DIM).mean(axis=1)
    loss = info_nce_loss(v_mean, a_feat, temperature)
    return v_mean, a_feat, loss


if __name__ == "__main__":
    key = jax.random.PRNGKey(0)
    k_vid, k_spec, k_vp, k_ap = jax.random.split(key, 4)

    # ContrastiveLearning reshapes video features to (length, 3, 128), so the
    # video batch is 3x the spectrogram batch.  Video is NCDHW, spectrogram NCHW.
    video = jax.random.normal(k_vid, (6, 3, 2, 16, 16), jnp.float32)
    spectrogram = jax.random.normal(k_spec, (2, 1, 16, 16), jnp.float32)

    vision_params = _init_modality_params(k_vp, f_in=3 * 2 * 16 * 16)
    audio_params = _init_modality_params(k_ap, f_in=1 * 16 * 16)

    v_feat, a_feat, loss = contrastive_forward(video, spectrogram,
                                               vision_params, audio_params)
    jax.block_until_ready((v_feat, a_feat, loss))

    assert v_feat.shape == (2, FEATURE_DIM)
    assert a_feat.shape == (2, FEATURE_DIM)
    assert loss.shape == ()
    print("KERNEL_OK")
</pallas_src>

<mosaic_0001>
module attributes {stable_mosaic.version = 11 : i64} {
  func.func @_encoder_kernel(%arg0: i32, %arg1: memref<16x1536xbf16, #tpu.memory_space<vmem>>, %arg2: memref<1536x512xbf16, #tpu.memory_space<vmem>>, %arg3: memref<512x128xbf16, #tpu.memory_space<vmem>>, %arg4: memref<1x128xf32, #tpu.memory_space<vmem>>, %arg5: memref<1x128xf32, #tpu.memory_space<vmem>>, %arg6: memref<16x128xf32, #tpu.memory_space<vmem>>, %arg7: memref<16x512xf32, #tpu.memory_space<vmem>>) attributes {dimension_semantics = [#tpu.dimension_semantics<arbitrary>], iteration_bounds = array<i64: 1>, scalar_prefetch = 0 : i64, scratch_operands = 1 : i64, tpu.core_type = #tpu.core_type<tc>, window_params = [{transform_indices = @transform_0, window_bounds = array<i64: 16, 1536>}, {transform_indices = @transform_1, window_bounds = array<i64: 1536, 512>}, {pipeline_mode = #tpu.pipeline_mode<synchronous>, transform_indices = @transform_2, window_bounds = array<i64: 512, 128>}, {pipeline_mode = #tpu.pipeline_mode<synchronous>, transform_indices = @transform_3, window_bounds = array<i64: 1, 128>}, {pipeline_mode = #tpu.pipeline_mode<synchronous>, transform_indices = @transform_4, window_bounds = array<i64: 1, 128>}, {pipeline_mode = #tpu.pipeline_mode<synchronous>, transform_indices = @transform_5, window_bounds = array<i64: 16, 128>}]} {
    %c0_i32 = arith.constant 0 : i32
    %0 = arith.cmpi eq, %arg0, %c0_i32 : i32
    %1 = arith.extui %0 : i1 to i32
    %c0_i32_0 = arith.constant 0 : i32
    %2 = arith.cmpi ne, %1, %c0_i32_0 : i32
    scf.if %2 {
      %cst_10 = arith.constant 0.000000e+00 : f32
      %12 = vector.broadcast %cst_10 : f32 to vector<16x512xf32>
      %c0_11 = arith.constant 0 : index
      %c0_12 = arith.constant 0 : index
      %13 = vector.load %arg7[%c0_11, %c0_12] : memref<16x512xf32, #tpu.memory_space<vmem>>, vector<16x512xf32>
      tpu.vector_store %arg7[%c0_11, %c0_12], %12 {strides = array<i32>} : memref<16x512xf32, #tpu.memory_space<vmem>>, vector<16x512xf32>,
    } else {
    }
    %c0 = arith.constant 0 : index
    %c0_1 = arith.constant 0 : index
    %3 = vector.load %arg7[%c0, %c0_1] : memref<16x512xf32, #tpu.memory_space<vmem>>, vector<16x512xf32>
    %c0_2 = arith.constant 0 : index
    %c0_3 = arith.constant 0 : index
    %4 = vector.load %arg1[%c0_2, %c0_3] : memref<16x1536xbf16, #tpu.memory_space<vmem>>, vector<16x1536xbf16>
    %c0_4 = arith.constant 0 : index
    %c0_5 = arith.constant 0 : index
    %5 = vector.load %arg2[%c0_4, %c0_5] : memref<1536x512xbf16, #tpu.memory_space<vmem>>, vector<1536x512xbf16>
    %cst = arith.constant dense<0.000000e+00> : vector<16x512xf32>
    %6 = tpu.matmul %4, %5, %cst {dimension_numbers = #tpu.dot_dimension_numbers<[1], [0], [0], [1], [0, 0, 1, 1], [], []>} : vector<16x1536xbf16>, vector<1536x512xbf16>, vector<16x512xf32> -> vector<16x512xf32>
    %7 = arith.addf %3, %6 : vector<16x512xf32>
    %c0_6 = arith.constant 0 : index
    %c0_7 = arith.constant 0 : index
    %8 = vector.load %arg7[%c0_6, %c0_7] : memref<16x512xf32, #tpu.memory_space<vmem>>, vector<16x512xf32>
    tpu.vector_store %arg7[%c0_6, %c0_7], %7 {strides = array<i32>} : memref<16x512xf32, #tpu.memory_space<vmem>>, vector<16x512xf32>,
    %c0_i32_8 = arith.constant 0 : i32
    %9 = arith.cmpi eq, %arg0, %c0_i32_8 : i32
    %10 = arith.extui %9 : i1 to i32
    %c0_i32_9 = arith.constant 0 : i32
    %11 = arith.cmpi ne, %10, %c0_i32_9 : i32
    scf.if %11 {
      %c0_10 = arith.constant 0 : index
      %c0_11 = arith.constant 0 : index
      %12 = vector.load %arg7[%c0_10, %c0_11] : memref<16x512xf32, #tpu.memory_space<vmem>>, vector<16x512xf32>
      %13 = arith.truncf %12 : vector<16x512xf32> to vector<16x512xbf16>
      %c0_12 = arith.constant 0 : index
      %c0_13 = arith.constant 0 : index
      %14 = vector.load %arg3[%c0_12, %c0_13] : memref<512x128xbf16, #tpu.memory_space<vmem>>, vector<512x128xbf16>
      %cst_14 = arith.constant dense<0.000000e+00> : vector<16x128xf32>
      %15 = tpu.matmul %13, %14, %cst_14 {dimension_numbers = #tpu.dot_dimension_numbers<[1], [0], [0], [1], [0, 0, 1, 1], [], []>} : vector<16x512xbf16>, vector<512x128xbf16>, vector<16x128xf32> -> vector<16x128xf32>
      %16 = tpu.iota {dimensions = array<i32: 0>} : vector<16x128xi32>
      %c6_i32 = arith.constant 6 : i32
      %17 = vector.broadcast %c6_i32 : i32 to vector<16x128xi32>
      %18 = arith.cmpi slt, %16, %17 : vector<16x128xi32>
      %19 = arith.extui %18 : vector<16x128xi1> to vector<16x128xi32>
      %20 = arith.sitofp %19 : vector<16x128xi32> to vector<16x128xf32>
      %21 = arith.mulf %15, %20 : vector<16x128xf32>
      %cst_15 = arith.constant dense<0.000000e+00> : vector<128xf32>
      %22 = vector.multi_reduction <add>, %21, %cst_15 [0] : vector<16x128xf32> to vector<128xf32>
      %23 = vector.shape_cast %22 : vector<128xf32> to vector<1x128xf32>
      %cst_16 = arith.constant 0.166666672 : f32
      %24 = vector.broadcast %cst_16 : f32 to vector<1x128xf32>
      %25 = arith.mulf %23, %24 : vector<1x128xf32>
      %26 = vector.broadcast %25 : vector<1x128xf32> to vector<16x128xf32>
      %27 = arith.subf %15, %26 : vector<16x128xf32>
      %28 = arith.mulf %27, %20 : vector<16x128xf32>
      %29 = arith.mulf %28, %28 : vector<16x128xf32>
      %cst_17 = arith.constant dense<0.000000e+00> : vector<128xf32>
      %30 = vector.multi_reduction <add>, %29, %cst_17 [0] : vector<16x128xf32> to vector<128xf32>
      %31 = vector.shape_cast %30 : vector<128xf32> to vector<1x128xf32>
      %cst_18 = arith.constant 0.166666672 : f32
      %32 = vector.broadcast %cst_18 : f32 to vector<1x128xf32>
      %33 = arith.mulf %31, %32 : vector<1x128xf32>
      %c0_19 = arith.constant 0 : index
      %c0_20 = arith.constant 0 : index
      %34 = vector.load %arg4[%c0_19, %c0_20] : memref<1x128xf32, #tpu.memory_space<vmem>>, vector<1x128xf32>
      %cst_21 = arith.constant 9.99999974E-6 : f32
      %35 = vector.broadcast %cst_21 : f32 to vector<1x128xf32>
      %36 = arith.addf %33, %35 : vector<1x128xf32>
      %37 = math.rsqrt %36 : vector<1x128xf32>
      %38 = arith.mulf %34, %37 : vector<1x128xf32>
      %c0_22 = arith.constant 0 : index
      %c0_23 = arith.constant 0 : index
      %39 = vector.load %arg5[%c0_22, %c0_23] : memref<1x128xf32, #tpu.memory_space<vmem>>, vector<1x128xf32>
      %40 = arith.mulf %25, %38 : vector<1x128xf32>
      %41 = arith.subf %39, %40 : vector<1x128xf32>
      %42 = vector.broadcast %38 : vector<1x128xf32> to vector<16x128xf32>
      %43 = arith.mulf %15, %42 : vector<16x128xf32>
      %44 = vector.broadcast %41 : vector<1x128xf32> to vector<16x128xf32>
      %45 = arith.addf %43, %44 : vector<16x128xf32>
      %cst_24 = arith.constant 0.000000e+00 : f32
      %46 = vector.broadcast %cst_24 : f32 to vector<16x128xf32>
      %47 = arith.maximumf %45, %46 : vector<16x128xf32>
      %c0_25 = arith.constant 0 : index
      %c0_26 = arith.constant 0 : index
      %48 = vector.load %arg6[%c0_25, %c0_26] : memref<16x128xf32, #tpu.memory_space<vmem>>, vector<16x128xf32>
      tpu.vector_store %arg6[%c0_25, %c0_26], %47 {strides = array<i32>} : memref<16x128xf32, #tpu.memory_space<vmem>>, vector<16x128xf32>,
    } else {
    }
    return
  }
  func.func @transform_0(%arg0: i32) -> (i32, i32) {
    %c0_i32 = arith.constant 0 : i32
    %c0_i32_0 = arith.constant 0 : i32
    return %c0_i32, %arg0 : i32, i32
  }
  func.func @transform_1(%arg0: i32) -> (i32, i32) {
    %c0_i32 = arith.constant 0 : i32
    %c0_i32_0 = arith.constant 0 : i32
    return %arg0, %c0_i32 : i32, i32
  }
  func.func @transform_2(%arg0: i32) -> (i32, i32) {
    %c0_i32 = arith.constant 0 : i32
    %c0_i32_0 = arith.constant 0 : i32
    %c0_i32_1 = arith.constant 0 : i32
    return %c0_i32, %c0_i32_0 : i32, i32
  }
  func.func @transform_3(%arg0: i32) -> (i32, i32) {
    %c0_i32 = arith.constant 0 : i32
    %c0_i32_0 = arith.constant 0 : i32
    %c0_i32_1 = arith.constant 0 : i32
    return %c0_i32, %c0_i32_0 : i32, i32
  }
  func.func @transform_4(%arg0: i32) -> (i32, i32) {
    %c0_i32 = arith.constant 0 : i32
    %c0_i32_0 = arith.constant 0 : i32
    %c0_i32_1 = arith.constant 0 : i32
    return %c0_i32, %c0_i32_0 : i32, i32
  }
  func.func @transform_5(%arg0: i32) -> (i32, i32) {
    %c0_i32 = arith.constant 0 : i32
    %c0_i32_0 = arith.constant 0 : i32
    %c0_i32_1 = arith.constant 0 : i32
    return %c0_i32, %c0_i32_0 : i32, i32
  }
}

</mosaic_0001>

<bundles_post_ra>
// kernel: tpu_custom_call.1
= control target key start
LH: loop header
LB: loop body
LE: loop exit
PB: predicated region body
PF: predicated region fallthrough
CT: control target
= control target key end

     0   :  { %10 = vsyncpa [#allocation4], 0  ;;  %s4859_s0 = inlined_call_operand.hbm [shape: bf16[16,1536], index: 0, kind: input, shape index: {}]   ;;  %s4860_s1 = inlined_call_operand.hbm [shape: bf16[1536,512], index: 1, kind: input, shape index: {}]   ;;  %s4861_s2 = inlined_call_operand.hbm [shape: bf16[512,128], index: 2, kind: input, shape index: {}]   ;;  %s4862_s3 = inlined_call_operand.hbm [shape: f32[1,128], index: 3, kind: input, shape index: {}]   ;;  %s4863_s4 = inlined_call_operand.hbm [shape: f32[1,128], index: 4, kind: input, shape index: {}]   ;;  %s4864_s5 = inlined_call_operand.hbm [shape: f32[16,128], index: 5, kind: output, shape index: {}]  }
   0x1   :  { %11 = vsyncpa [#allocation7], 0 }
   0x2   :  { %12 = vsyncpa [#allocation10], 0 }
   0x3   :  { %13 = vsyncpa [#allocation5], 0  ;;  %s4742_s18 = smov [#allocation6]   ;;  %s4602_s22 = scalar_lea.hbm %s4860_s1, 49152 }
   0x4   :  { %s31_s19 = sshll.u32 %s4742_s18, 4  ;;  %p4603_p0 = scmp.ne.s32.totalorder %s4860_s1, %s4602_s22  ;;  %s32_s19 = int_to_ptr.vmem [resolvable:$true] %s31_s19 }
   0x5   :  { %p4606_p1 = scmp.lt.u32.totalorder %s4602_s22, %s4860_s1 }
   0x7   :  { %p4608_p2 = pnand %p4606_p1, %p4603_p0 }
   0x9   :  { %4611 = shalt.err (!%p4608_p2)
}
   0xa   :  { %s4612_s27 = scalar_lea.vmem %s32_s19, 49152  ;;  %p4617_p4 = scmp.lt.s32.totalorder %s32_s19, %s32_s19 }
   0xb   :  { %p4613_p3 = scmp.ne.s32.totalorder %s32_s19, %s4612_s27  ;;  %p4618_p5 = scmp.lt.s32.totalorder %s4612_s27, %s4612_s27 }
   0xd   :  { %p4619_p6 = por %p4618_p5, %p4617_p4 }
   0xf   :  { %p4620_p7 = pnand %p4619_p6, %p4613_p3 }
  0x11   :  { %4623 = shalt.err (!%p4620_p7)
}
  0x12   :  { %s4743_s28 = smov 256   ;;  %s4744_s29 = smov 16  }
  0x13   :  { %37 = dma.hbm_to_vmem [thread:$0]  %s4860_s1, 49152, %s32_s19, [#allocation7], %s4743_s28, %s4743_s28, %s4744_s29  }
  0x14   :  { %s4745_s7 = smov [#allocation9]   ;;  %s4746_s9 = smov [#allocation3]  }
  0x15   :  { %s56_s8 = sshll.u32 %s4745_s7, 4  ;;  %s19_s10 = sshll.u32 %s4746_s9, 4  ;;  %s57_s8 = int_to_ptr.vmem [resolvable:$true] %s56_s8  ;;  %s20_s10 = int_to_ptr.vmem [resolvable:$true] %s19_s10 }
  0x16   :  { %s4624_s13 = scalar_lea.hbm %s4862_s3, 16 }
  0x17   :  { %p4625_p8 = scmp.ne.s32.totalorder %s4862_s3, %s4624_s13  ;;  %p4628_p9 = scmp.lt.u32.totalorder %s4624_s13, %s4862_s3 }
  0x19   :  { %p4630_p10 = pnand %p4628_p9, %p4625_p8 }
  0x1b   :  { %4633 = shalt.err (!%p4630_p10)
}
  0x1c   :  { %s4634_s1 = scalar_lea.vmem %s57_s8, 16  ;;  %s4638_s18 = scalar_lea.vmem %s57_s8, 32 }
  0x1d   :  { %p4635_p11 = scmp.ne.s32.totalorder %s57_s8, %s4634_s1  ;;  %p4639_p12 = scmp.lt.s32.totalorder %s57_s8, %s57_s8 }
  0x1e   :  { %p4640_p13 = scmp.lt.s32.totalorder %s4638_s18, %s4634_s1 }
  0x20   :  { %p4641_p0 = por %p4640_p13, %p4639_p12 }
  0x22   :  { %p4642_p1 = pnand %p4641_p0, %p4635_p11 }
  0x24   :  { %4645 = shalt.err (!%p4642_p1)
}
  0x25   :  { %59 = dma.hbm_to_vmem [thread:$0]  %s4862_s3, 16, %s57_s8, [#allocation10]  }
  0x26   :  { %s4646_s23 = scalar_lea.hbm %s4859_s0, 1536 }
  0x27   :  { %p4647_p2 = scmp.ne.s32.totalorder %s4859_s0, %s4646_s23  ;;  %p4650_p3 = scmp.lt.u32.totalorder %s4646_s23, %s4859_s0 }
  0x29   :  { %p4652_p4 = pnand %p4650_p3, %p4647_p2 }
  0x2b   :  { %4655 = shalt.err (!%p4652_p4)
}
  0x2c   :  { %s4656_s28 = scalar_lea.vmem %s20_s10, 1536  ;;  %p4661_p6 = scmp.lt.s32.totalorder %s20_s10, %s20_s10 }
  0x2d   :  { %p4657_p5 = scmp.ne.s32.totalorder %s20_s10, %s4656_s28  ;;  %p4662_p7 = scmp.lt.s32.totalorder %s4656_s28, %s4656_s28 }
  0x2f   :  { %p4663_p8 = por %p4662_p7, %p4661_p6 }
  0x31   :  { %p4664_p9 = pnand %p4663_p8, %p4657_p5 }
  0x33   :  { %4667 = shalt.err (!%p4664_p9)
}
  0x34   :  { %s4747_s3 = smov 768   ;;  %s4748_s29 = smov 48  }
  0x35   :  { %25 = dma.hbm_to_vmem [thread:$0]  %s4859_s0, 1536, %s20_s10, [#allocation4], %s4747_s3, %s4747_s3, %s4748_s29  }
  0x36   :  { %s4749_s7 = smov [#allocation8]   ;;  %s4668_s12 = scalar_lea.hbm %s4861_s2, 4096 }
  0x37   :  { %s43_s8 = sshll.u32 %s4749_s7, 4  ;;  %p4669_p10 = scmp.ne.s32.totalorder %s4861_s2, %s4668_s12  ;;  %s44_s8 = int_to_ptr.vmem [resolvable:$true] %s43_s8 }
  0x38   :  { %p4672_p11 = scmp.lt.u32.totalorder %s4668_s12, %s4861_s2 }
  0x3a   :  { %p4674_p12 = pnand %p4672_p11, %p4669_p10 }
  0x3c   :  { %4677 = shalt.err (!%p4674_p12)
}
  0x3d   :  { %s4678_s17 = scalar_lea.vmem %s44_s8, 4096  ;;  %p4683_p0 = scmp.lt.s32.totalorder %s44_s8, %s44_s8 }
  0x3e   :  { %p4679_p13 = scmp.ne.s32.totalorder %s44_s8, %s4678_s17  ;;  %p4684_p1 = scmp.lt.s32.totalorder %s4678_s17, %s4678_s17 }
  0x40   :  { %p4685_p2 = por %p4684_p1, %p4683_p0 }
  0x42   :  { %p4686_p3 = pnand %p4685_p2, %p4679_p13 }
  0x44   :  { %4689 = shalt.err (!%p4686_p3)
}
  0x45   :  { %s4750_s0 = smov 64   ;;  %s4751_s10 = smov 4  }
  0x46   :  { %49 = dma.hbm_to_vmem [thread:$0]  %s4861_s2, 4096, %s44_s8, [#allocation7], %s4750_s0, %s4750_s0, %s4751_s10  }
  0x47   :  { %s4752_s19 = smov [#allocation11]   ;;  %s4690_s23 = scalar_lea.hbm %s4863_s4, 16 }
  0x48   :  { %s66_s20 = sshll.u32 %s4752_s19, 4  ;;  %p4691_p4 = scmp.ne.s32.totalorder %s4863_s4, %s4690_s23  ;;  %s67_s20 = int_to_ptr.vmem [resolvable:$true] %s66_s20 }
  0x49   :  { %p4694_p5 = scmp.lt.u32.totalorder %s4690_s23, %s4863_s4 }
  0x4b   :  { %p4696_p6 = pnand %p4694_p5, %p4691_p4 }
  0x4d   :  { %4699 = shalt.err (!%p4696_p6)
}
  0x4e   :  { %s4700_s28 = scalar_lea.vmem %s67_s20, 16  ;;  %s4704_s2 = scalar_lea.vmem %s67_s20, 32 }
  0x4f   :  { %p4701_p7 = scmp.ne.s32.totalorder %s67_s20, %s4700_s28  ;;  %p4705_p8 = scmp.lt.s32.totalorder %s67_s20, %s67_s20 }
  0x50   :  { %p4706_p9 = scmp.lt.s32.totalorder %s4704_s2, %s4700_s28 }
  0x52   :  { %p4707_p10 = por %p4706_p9, %p4705_p8 }
  0x54   :  { %p4708_p11 = pnand %p4707_p10, %p4701_p7 }
  0x56   :  { %4711 = shalt.err (!%p4708_p11)
}
  0x57   :  { %69 = dma.hbm_to_vmem [thread:$0]  %s4863_s4, 16, %s67_s20, [#allocation10]  }
  0x58   :  { %4734 = dma.done.wait [#allocation4], 1536  }
  0x59   :  { %4735 = vsyncadd [#allocation4], 4294965760 }
  0x5a   :  { %4736 = dma.done.wait [#allocation7], 53248  }
  0x5b   :  { %4737 = vsyncadd [#allocation7], 4294914048 }
  0x5c   :  { %4738 = dma.done.wait [#allocation10], 32  }
  0x5d   :  { %4739 = vsyncadd [#allocation10], 4294967264  ;;  %v3974_v0 = vld [vmem:[#allocation6 + $0x4] ss:$16 sps:$4 sm:$0xff]   ;;  %v3976_v1 = vld [vmem:[#allocation6 + $0xc] ss:$16 sps:$4 sm:$0xff]  }
  0x5e   :  { %2482 = vmatprep.subr.bf16.mxu0 %v3974_v0  ;;  %v3978_v2 = vld [vmem:[#allocation6] ss:$16 sps:$4 sm:$0xff]   ;;  %v3979_v3 = vld [vmem:[#allocation6 + $0x8] ss:$16 sps:$4 sm:$0xff]   ;;  %2740 = vmatprep.subr.bf16.mxu1 %v3976_v1  ;;  %v3980_v4 = vld [vmem:[#allocation6 + $0x24] ss:$16 sps:$4 sm:$0xff]  }
  0x5f   :  { %2483 = vmatpush1.bf16.msra.mxu0 %v3978_v2  ;;  %2741 = vmatpush1.bf16.msra.mxu1 %v3979_v3  ;;  %v3982_v5 = vld [vmem:[#allocation6 + $0x2c] ss:$16 sps:$4 sm:$0xff]   ;;  %v3984_v6 = vld [vmem:[#allocation6 + $0x20] ss:$16 sps:$4 sm:$0xff]   ;;  %v3985_v7 = vld [vmem:[#allocation6 + $0x28] ss:$16 sps:$4 sm:$0xff]  }
  0x60   :  { %2484 = vmatprep.subr.bf16.mxu0 %v3980_v4  ;;  %2742 = vmatprep.subr.bf16.mxu1 %v3982_v5  ;;  %v3986_v8 = vld [vmem:[#allocation6 + $0x44] ss:$16 sps:$4 sm:$0xff]   ;;  %v3988_v9 = vld [vmem:[#allocation6 + $0x4c] ss:$16 sps:$4 sm:$0xff]   ;;  %v3990_v10 = vld [vmem:[#allocation6 + $0x40] ss:$16 sps:$4 sm:$0xff]  }
  0x61   :  { %v3991_v11 = vld [vmem:[#allocation6 + $0x48] ss:$16 sps:$4 sm:$0xff]   ;;  %v3992_v12 = vld [vmem:[#allocation6 + $0x64] ss:$16 sps:$4 sm:$0xff]   ;;  %v3994_v13 = vld [vmem:[#allocation6 + $0x6c] ss:$16 sps:$4 sm:$0xff]  }
  0x62   :  { %v3996_v14 = vld [vmem:[#allocation6 + $0x60] ss:$16 sps:$4 sm:$0xff]   ;;  %v3997_v15 = vld [vmem:[#allocation6 + $0x68] ss:$16 sps:$4 sm:$0xff]   ;;  %v3998_v16 = vld [vmem:[#allocation6 + $0x84] ss:$16 sps:$4 sm:$0xff]  }
  0x63   :  { %2485 = vmatpush1.bf16.msra.mxu0 %v3984_v6  ;;  %2743 = vmatpush1.bf16.msra.mxu1 %v3985_v7  ;;  %v4000_v17 = vld [vmem:[#allocation6 + $0x8c] ss:$16 sps:$4 sm:$0xff]   ;;  %v4002_v18 = vld [vmem:[#allocation6 + $0x80] ss:$16 sps:$4 sm:$0xff]   ;;  %v4003_v19 = vld [vmem:[#allocation6 + $0x88] ss:$16 sps:$4 sm:$0xff]  }
  0x64   :  { %2486 = vmatprep.subr.bf16.mxu0 %v3986_v8  ;;  %2744 = vmatprep.subr.bf16.mxu1 %v3988_v9  ;;  %v4004_v20 = vld [vmem:[#allocation6 + $0xa4] ss:$16 sps:$4 sm:$0xff]   ;;  %v4006_v21 = vld [vmem:[#allocation6 + $0xac] ss:$16 sps:$4 sm:$0xff]   ;;  %v4008_v22 = vld [vmem:[#allocation6 + $0xa0] ss:$16 sps:$4 sm:$0xff]  }
  0x65   :  { %v4009_v23 = vld [vmem:[#allocation6 + $0xa8] ss:$16 sps:$4 sm:$0xff]   ;;  %v4010_v24 = vld [vmem:[#allocation6 + $0xc4] ss:$16 sps:$4 sm:$0xff]   ;;  %v4012_v25 = vld [vmem:[#allocation6 + $0xcc] ss:$16 sps:$4 sm:$0xff]  }
  0x66   :  { %v4014_v26 = vld [vmem:[#allocation6 + $0xc0] ss:$16 sps:$4 sm:$0xff]   ;;  %v4015_v27 = vld [vmem:[#allocation6 + $0xc8] ss:$16 sps:$4 sm:$0xff]   ;;  %v4016_v28 = vld [vmem:[#allocation6 + $0xe4] ss:$16 sps:$4 sm:$0xff]  }
  0x67   :  { %2487 = vmatpush1.bf16.msra.mxu0 %v3990_v10  ;;  %2745 = vmatpush1.bf16.msra.mxu1 %v3991_v11  ;;  %v4018_v29 = vld [vmem:[#allocation6 + $0xec] ss:$16 sps:$4 sm:$0xff]   ;;  %v4020_v30 = vld [vmem:[#allocation6 + $0xe0] ss:$16 sps:$4 sm:$0xff]   ;;  %v4021_v31 = vld [vmem:[#allocation6 + $0xe8] ss:$16 sps:$4 sm:$0xff]  }
  0x68   :  { %2488 = vmatprep.subr.bf16.mxu0 %v3992_v12  ;;  %2746 = vmatprep.subr.bf16.mxu1 %v3994_v13  ;;  %v4022_v32 = vld [vmem:[#allocation6 + $0x104] ss:$16 sps:$4 sm:$0xff]   ;;  %v4024_v33 = vld [vmem:[#allocation6 + $0x10c] ss:$16 sps:$4 sm:$0xff]   ;;  %v4026_v34 = vld [vmem:[#allocation6 + $0x100] ss:$16 sps:$4 sm:$0xff]  }
  0x69   :  { %v4027_v35 = vld [vmem:[#allocation6 + $0x108] ss:$16 sps:$4 sm:$0xff]   ;;  %v4028_v36 = vld [vmem:[#allocation6 + $0x124] ss:$16 sps:$4 sm:$0xff]   ;;  %v4030_v37 = vld [vmem:[#allocation6 + $0x12c] ss:$16 sps:$4 sm:$0xff]  }
  0x6a   :  { %v4032_v38 = vld [vmem:[#allocation6 + $0x120] ss:$16 sps:$4 sm:$0xff]   ;;  %v4033_v39 = vld [vmem:[#allocation6 + $0x128] ss:$16 sps:$4 sm:$0xff]   ;;  %v4034_v40 = vld [vmem:[#allocation6 + $0x144] ss:$16 sps:$4 sm:$0xff]  }
  0x6b   :  { %2489 = vmatpush1.bf16.msra.mxu0 %v3996_v14  ;;  %2747 = vmatpush1.bf16.msra.mxu1 %v3997_v15  ;;  %v4036_v41 = vld [vmem:[#allocation6 + $0x14c] ss:$16 sps:$4 sm:$0xff]   ;;  %v4038_v42 = vld [vmem:[#allocation6 + $0x140] ss:$16 sps:$4 sm:$0xff]   ;;  %v4039_v43 = vld [vmem:[#allocation6 + $0x148] ss:$16 sps:$4 sm:$0xff]  }
  0x6c   :  { %2490 = vmatprep.subr.bf16.mxu0 %v3998_v16  ;;  %2748 = vmatprep.subr.bf16.mxu1 %v4000_v17  ;;  %v4040_v44 = vld [vmem:[#allocation6 + $0x164] ss:$16 sps:$4 sm:$0xff]   ;;  %v4042_v45 = vld [vmem:[#allocation6 + $0x16c] ss:$16 sps:$4 sm:$0xff]   ;;  %v4044_v46 = vld [vmem:[#allocation6 + $0x160] ss:$16 sps:$4 sm:$0xff]  }
  0x6d   :  { %v4045_v47 = vld [vmem:[#allocation6 + $0x168] ss:$16 sps:$4 sm:$0xff]   ;;  %v4072_v48 = vld [vmem:[#allocation3 + $0x4] ss:$48 sps:$4 sm:$0xff]   ;;  %v4048_v50 = vld [vmem:[#allocation6 + $0x18c] ss:$16 sps:$4 sm:$0xff]  }
  0x6e   :  { %v4046_v49 = vld [vmem:[#allocation6 + $0x184] ss:$16 sps:$4 sm:$0xff]   ;;  %2514 = vmatprep.mubr.bf16.mxu0 %v4072_v48  ;;  %2772 = vmatprep.mubr.bf16.mxu1 %v4072_v48  ;;  %v4050_v51 = vld [vmem:[#allocation6 + $0x180] ss:$16 sps:$4 sm:$0xff]   ;;  %v4051_v52 = vld [vmem:[#allocation6 + $0x188] ss:$16 sps:$4 sm:$0xff]  }
  0x6f   :  { %2491 = vmatpush1.bf16.msra.mxu0 %v4002_v18  ;;  %2749 = vmatpush1.bf16.msra.mxu1 %v4003_v19  ;;  %v4052_v53 = vld [vmem:[#allocation6 + $0x1a4] ss:$16 sps:$4 sm:$0xff]   ;;  %v4054_v54 = vld [vmem:[#allocation6 + $0x1ac] ss:$16 sps:$4 sm:$0xff]   ;;  %v4056_v55 = vld [vmem:[#allocation6 + $0x1a0] ss:$16 sps:$4 sm:$0xff]  }
  0x70   :  { %2492 = vmatprep.subr.bf16.mxu0 %v4004_v20  ;;  %2750 = vmatprep.subr.bf16.mxu1 %v4006_v21  ;;  %v4057_v56 = vld [vmem:[#allocation6 + $0x1a8] ss:$16 sps:$4 sm:$0xff]   ;;  %v4058_v57 = vld [vmem:[#allocation6 + $0x1c4] ss:$16 sps:$4 sm:$0xff]   ;;  %v4060_v58 = vld [vmem:[#allocation6 + $0x1cc] ss:$16 sps:$4 sm:$0xff]  }
  0x71   :  { %v4062_v59 = vld [vmem:[#allocation6 + $0x1c0] ss:$16 sps:$4 sm:$0xff]   ;;  %v4063_v60 = vld [vmem:[#allocation6 + $0x1c8] ss:$16 sps:$4 sm:$0xff]   ;;  %v4064_v61 = vld [vmem:[#allocation6 + $0x1e4] ss:$16 sps:$4 sm:$0xff]  }
  0x72   :  { %v4066_v62 = vld [vmem:[#allocation6 + $0x1ec] ss:$16 sps:$4 sm:$0xff]   ;;  %v4068_v63 = vld [vmem:[#allocation6 + $0x1e0] ss:$16 sps:$4 sm:$0xff]   ;;  %v4069_v0 = vld [vmem:[#allocation6 + $0x1e8] ss:$16 sps:$4 sm:$0xff]  }
  0x73   :  { %2493 = vmatpush1.bf16.msra.mxu0 %v4008_v22  ;;  %2751 = vmatpush1.bf16.msra.mxu1 %v4009_v23  ;;  %v4075_v1 = vld [vmem:[#allocation6 + $0x204] ss:$16 sps:$4 sm:$0xff]   ;;  %v4078_v2 = vld [vmem:[#allocation6 + $0x20c] ss:$16 sps:$4 sm:$0xff]   ;;  %v4070_v3 = vld [vmem:[#allocation3] ss:$48 sps:$4 sm:$0xff]  }
  0x74   :  { %2494 = vmatprep.subr.bf16.mxu0 %v4010_v24  ;;  %2752 = vmatprep.subr.bf16.mxu1 %v4012_v25  ;;  %v4073_v4 = vld [vmem:[#allocation6 + $0x200] ss:$16 sps:$4 sm:$0xff]   ;;  %v4076_v5 = vld [vmem:[#allocation6 + $0x208] ss:$16 sps:$4 sm:$0xff]   ;;  %v4081_v6 = vld [vmem:[#allocation6 + $0x224] ss:$16 sps:$4 sm:$0xff]  }
  0x75   :  { %v4084_v7 = vld [vmem:[#allocation6 + $0x22c] ss:$16 sps:$4 sm:$0xff]   ;;  %v4079_v8 = vld [vmem:[#allocation6 + $0x220] ss:$16 sps:$4 sm:$0xff]   ;;  %v4082_v9 = vld [vmem:[#allocation6 + $0x228] ss:$16 sps:$4 sm:$0xff]  }
  0x76   :  { %v4087_v10 = vld [vmem:[#allocation6 + $0x244] ss:$16 sps:$4 sm:$0xff]   ;;  %v4090_v11 = vld [vmem:[#allocation6 + $0x24c] ss:$16 sps:$4 sm:$0xff]   ;;  %v4085_v12 = vld [vmem:[#allocation6 + $0x240] ss:$16 sps:$4 sm:$0xff]  }
  0x77   :  { %2495 = vmatpush1.bf16.msra.mxu0 %v4014_v26  ;;  %2753 = vmatpush1.bf16.msra.mxu1 %v4015_v27  ;;  %v4088_v13 = vld [vmem:[#allocation6 + $0x248] ss:$16 sps:$4 sm:$0xff]   ;;  %v4093_v14 = vld [vmem:[#allocation6 + $0x264] ss:$16 sps:$4 sm:$0xff]   ;;  %v4096_v15 = vld [vmem:[#allocation6 + $0x26c] ss:$16 sps:$4 sm:$0xff]  }
  0x78   :  { %2496 = vmatprep.subr.bf16.mxu0 %v4016_v28  ;;  %2754 = vmatprep.subr.bf16.mxu1 %v4018_v29  ;;  %v4091_v16 = vld [vmem:[#allocation6 + $0x260] ss:$16 sps:$4 sm:$0xff]   ;;  %v4094_v17 = vld [vmem:[#allocation6 + $0x268] ss:$16 sps:$4 sm:$0xff]   ;;  %v4099_v18 = vld [vmem:[#allocation6 + $0x284] ss:$16 sps:$4 sm:$0xff]  }
  0x79   :  { %v4102_v19 = vld [vmem:[#allocation6 + $0x28c] ss:$16 sps:$4 sm:$0xff]   ;;  %v4097_v20 = vld [vmem:[#allocation6 + $0x280] ss:$16 sps:$4 sm:$0xff]   ;;  %v4100_v21 = vld [vmem:[#allocation6 + $0x288] ss:$16 sps:$4 sm:$0xff]  }
  0x7a   :  { %v4105_v22 = vld [vmem:[#allocation6 + $0x2a4] ss:$16 sps:$4 sm:$0xff]   ;;  %v4108_v23 = vld [vmem:[#allocation6 + $0x2ac] ss:$16 sps:$4 sm:$0xff]   ;;  %v4103_v24 = vld [vmem:[#allocation6 + $0x2a0] ss:$16 sps:$4 sm:$0xff]  }
  0x7b   :  { %2497 = vmatpush1.bf16.msra.mxu0 %v4020_v30  ;;  %2755 = vmatpush1.bf16.msra.mxu1 %v4021_v31  ;;  %v4106_v25 = vld [vmem:[#allocation6 + $0x2a8] ss:$16 sps:$4 sm:$0xff]   ;;  %v4111_v26 = vld [vmem:[#allocation6 + $0x2c4] ss:$16 sps:$4 sm:$0xff]   ;;  %v4114_v27 = vld [vmem:[#allocation6 + $0x2cc] ss:$16 sps:$4 sm:$0xff]  }
  0x7c   :  { %2498 = vmatprep.subr.bf16.mxu0 %v4022_v32  ;;  %2756 = vmatprep.subr.bf16.mxu1 %v4024_v33  ;;  %v4109_v28 = vld [vmem:[#allocation6 + $0x2c0] ss:$16 sps:$4 sm:$0xff]   ;;  %v4112_v29 = vld [vmem:[#allocation6 + $0x2c8] ss:$16 sps:$4 sm:$0xff]   ;;  %v4171_v30 = vld [vmem:[#allocation3 + $0xc] ss:$48 sps:$4 sm:$0xff]  }
  0x7d   :  { %v4117_v31 = vld [vmem:[#allocation6 + $0x2e4] ss:$16 sps:$4 sm:$0xff]   ;;  %v4120_v32 = vld [vmem:[#allocation6 + $0x2ec] ss:$16 sps:$4 sm:$0xff]   ;;  %v4115_v33 = vld [vmem:[#allocation6 + $0x2e0] ss:$16 sps:$4 sm:$0xff]  }
  0x7e   :  { %v4144_v48 = vld [vmem:[#allocation6 + $0x36c] ss:$16 sps:$4 sm:$0xff]   ;;  %s4754_s4 = smov [#allocation12]  }
  0x7f   :  { %2499 = vmatpush1.bf16.msra.mxu0 %v4026_v34  ;;  %2757 = vmatpush1.bf16.msra.mxu1 %v4027_v35  ;;  %v4118_v34 = vld [vmem:[#allocation6 + $0x2e8] ss:$16 sps:$4 sm:$0xff]   ;;  %v4123_v35 = vld [vmem:[#allocation6 + $0x304] ss:$16 sps:$4 sm:$0xff]   ;;  %s3432_s30 = sshll.u32 %s4754_s4, 4  ;;  %s3433_s30 = int_to_ptr.vmem [resolvable:$true] %s3432_s30 }
  0x80   :  { %2500 = vmatprep.subr.bf16.mxu0 %v4028_v36  ;;  %2758 = vmatprep.subr.bf16.mxu1 %v4030_v37  ;;  %v4126_v36 = vld [vmem:[#allocation6 + $0x30c] ss:$16 sps:$4 sm:$0xff]   ;;  %v4121_v37 = vld [vmem:[#allocation6 + $0x300] ss:$16 sps:$4 sm:$0xff]   ;;  %s4712_s6 = scalar_lea.vmem %s3433_s30, 256  ;;  %p4717_p13 = scmp.lt.s32.totalorder %s3433_s30, %s3433_s30 }
  0x81   :  { %p4713_p12 = scmp.ne.s32.totalorder %s3433_s30, %s4712_s6  ;;  %p4718_p0 = scmp.lt.s32.totalorder %s4712_s6, %s4712_s6 }
  0x83   :  { %2501 = vmatpush1.bf16.msra.mxu0 %v4032_v38  ;;  %2759 = vmatpush1.bf16.msra.mxu1 %v4033_v39  ;;  %v4124_v38 = vld [vmem:[#allocation6 + $0x308] ss:$16 sps:$4 sm:$0xff]   ;;  %v4129_v39 = vld [vmem:[#allocation6 + $0x324] ss:$16 sps:$4 sm:$0xff]   ;;  %p4719_p1 = por %p4718_p0, %p4717_p13 }
  0x84   :  { %2502 = vmatprep.subr.bf16.mxu0 %v4034_v40  ;;  %2760 = vmatprep.subr.bf16.mxu1 %v4036_v41  ;;  %v4132_v40 = vld [vmem:[#allocation6 + $0x32c] ss:$16 sps:$4 sm:$0xff]   ;;  %v4127_v41 = vld [vmem:[#allocation6 + $0x320] ss:$16 sps:$4 sm:$0xff]  }
  0x85   :  { %p4720_p2 = pnand %p4719_p1, %p4713_p12 }
  0x87   :  { %2503 = vmatpush1.bf16.msra.mxu0 %v4038_v42  ;;  %2761 = vmatpush1.bf16.msra.mxu1 %v4039_v43  ;;  %v4130_v42 = vld [vmem:[#allocation6 + $0x328] ss:$16 sps:$4 sm:$0xff]   ;;  %v4135_v43 = vld [vmem:[#allocation6 + $0x344] ss:$16 sps:$4 sm:$0xff]  }
  0x88   :  { %2504 = vmatprep.subr.bf16.mxu0 %v4040_v44  ;;  %2762 = vmatprep.subr.bf16.mxu1 %v4042_v45  ;;  %v4138_v44 = vld [vmem:[#allocation6 + $0x34c] ss:$16 sps:$4 sm:$0xff]   ;;  %v4133_v45 = vld [vmem:[#allocation6 + $0x340] ss:$16 sps:$4 sm:$0xff]  }
  0x8b   :  { %2505 = vmatpush1.bf16.msra.mxu0 %v4044_v46  ;;  %2763 = vmatpush1.bf16.msra.mxu1 %v4045_v47  ;;  %v4136_v46 = vld [vmem:[#allocation6 + $0x348] ss:$16 sps:$4 sm:$0xff]   ;;  %v4141_v47 = vld [vmem:[#allocation6 + $0x364] ss:$16 sps:$4 sm:$0xff]  }
  0x8c   :  { %2506 = vmatprep.subr.bf16.mxu0 %v4046_v49  ;;  %2764 = vmatprep.subr.bf16.mxu1 %v4048_v50  ;;  %v4139_v49 = vld [vmem:[#allocation6 + $0x360] ss:$16 sps:$4 sm:$0xff]   ;;  %v4142_v50 = vld [vmem:[#allocation6 + $0x368] ss:$16 sps:$4 sm:$0xff]  }
  0x8f   :  { %2507 = vmatpush1.bf16.msra.mxu0 %v4050_v51  ;;  %2765 = vmatpush1.bf16.msra.mxu1 %v4051_v52  ;;  %v4147_v51 = vld [vmem:[#allocation6 + $0x384] ss:$16 sps:$4 sm:$0xff]   ;;  %v4150_v52 = vld [vmem:[#allocation6 + $0x38c] ss:$16 sps:$4 sm:$0xff]  }
  0x90   :  { %2508 = vmatprep.subr.bf16.mxu0 %v4052_v53  ;;  %2766 = vmatprep.subr.bf16.mxu1 %v4054_v54  ;;  %v4145_v53 = vld [vmem:[#allocation6 + $0x380] ss:$16 sps:$4 sm:$0xff]   ;;  %v4148_v54 = vld [vmem:[#allocation6 + $0x388] ss:$16 sps:$4 sm:$0xff]  }
  0x93   :  { %2509 = vmatpush1.bf16.msra.mxu0 %v4056_v55  ;;  %2767 = vmatpush1.bf16.msra.mxu1 %v4057_v56  ;;  %v4153_v55 = vld [vmem:[#allocation6 + $0x3a4] ss:$16 sps:$4 sm:$0xff]   ;;  %v4156_v56 = vld [vmem:[#allocation6 + $0x3ac] ss:$16 sps:$4 sm:$0xff]  }
  0x94   :  { %2510 = vmatprep.subr.bf16.mxu0 %v4058_v57  ;;  %2768 = vmatprep.subr.bf16.mxu1 %v4060_v58  ;;  %v4151_v57 = vld [vmem:[#allocation6 + $0x3a0] ss:$16 sps:$4 sm:$0xff]   ;;  %v4154_v58 = vld [vmem:[#allocation6 + $0x3a8] ss:$16 sps:$4 sm:$0xff]  }
  0x97   :  { %2511 = vmatpush1.bf16.msra.mxu0 %v4062_v59  ;;  %2769 = vmatpush1.bf16.msra.mxu1 %v4063_v60  ;;  %v4159_v59 = vld [vmem:[#allocation6 + $0x3c4] ss:$16 sps:$4 sm:$0xff]   ;;  %v4162_v60 = vld [vmem:[#allocation6 + $0x3cc] ss:$16 sps:$4 sm:$0xff]  }
  0x98   :  { %2512 = vmatprep.subr.bf16.mxu0 %v4064_v61  ;;  %2770 = vmatprep.subr.bf16.mxu1 %v4066_v62  ;;  %v4157_v61 = vld [vmem:[#allocation6 + $0x3c0] ss:$16 sps:$4 sm:$0xff]   ;;  %v4160_v62 = vld [vmem:[#allocation6 + $0x3c8] ss:$16 sps:$4 sm:$0xff]  }
  0x9b   :  { %2513 = vmatpush1.bf16.msra.mxu0 %v4068_v63  ;;  %2771 = vmatpush1.bf16.msra.mxu1 %v4069_v0  ;;  %v4165_v63 = vld [vmem:[#allocation6 + $0x3e4] ss:$16 sps:$4 sm:$0xff]   ;;  %v4168_v0 = vld [vmem:[#allocation6 + $0x3ec] ss:$16 sps:$4 sm:$0xff]  }
  0x9c   :  { %2525 = vmatprep.subr.bf16.mxu0 %v4075_v1  ;;  %2783 = vmatprep.subr.bf16.mxu1 %v4078_v2  ;;  %v4163_v1 = vld [vmem:[#allocation6 + $0x3e0] ss:$16 sps:$4 sm:$0xff]   ;;  %v4166_v2 = vld [vmem:[#allocation6 + $0x3e8] ss:$16 sps:$4 sm:$0xff]  }
  0x9e   :  { %2515 = vmatmul.mubr.bf16.vlgmr.msra.gmra.mrb[0].mxu0 %v4070_v3  ;;  %2773 = vmatmul.mubr.bf16.vlgmr.msra.gmra.mrb[0].mxu1 %v4070_v3  ;;  %v4174_v3 = vld [vmem:[#allocation6 + $0x404] ss:$16 sps:$4 sm:$0xff]  }
  0x9f   :  { %2526 = vmatpush1.bf16.msra.mxu0 %v4073_v4  ;;  %2784 = vmatpush1.bf16.msra.mxu1 %v4076_v5  ;;  %v4177_v4 = vld [vmem:[#allocation6 + $0x40c] ss:$16 sps:$4 sm:$0xff]   ;;  %v4169_v5 = vld [vmem:[#allocation3 + $0x8] ss:$48 sps:$4 sm:$0xff]  }
  0xa0   :  { %2527 = vmatprep.subr.bf16.mxu0 %v4081_v6  ;;  %2785 = vmatprep.subr.bf16.mxu1 %v4084_v7  ;;  %v4172_v6 = vld [vmem:[#allocation6 + $0x400] ss:$16 sps:$4 sm:$0xff]   ;;  %v4175_v7 = vld [vmem:[#allocation6 + $0x408] ss:$16 sps:$4 sm:$0xff]  }
  0xa1   :  { %2557 = vmatprep.mubr.bf16.mxu0 %v4171_v30  ;;  %2815 = vmatprep.mubr.bf16.mxu1 %v4171_v30  ;;  %v4213_v30 = vld [vmem:[#allocation6 + $0x4cc] ss:$16 sps:$4 sm:$0xff]  }
  0xa3   :  { %2528 = vmatpush1.bf16.msra.mxu0 %v4079_v8  ;;  %2786 = vmatpush1.bf16.msra.mxu1 %v4082_v9  ;;  %v4180_v8 = vld [vmem:[#allocation6 + $0x424] ss:$16 sps:$4 sm:$0xff]   ;;  %v4183_v9 = vld [vmem:[#allocation6 + $0x42c] ss:$16 sps:$4 sm:$0xff]  }
  0xa4   :  { %2529 = vmatprep.subr.bf16.mxu0 %v4087_v10  ;;  %2787 = vmatprep.subr.bf16.mxu1 %v4090_v11  ;;  %v4178_v10 = vld [vmem:[#allocation6 + $0x420] ss:$16 sps:$4 sm:$0xff]   ;;  %v4181_v11 = vld [vmem:[#allocation6 + $0x428] ss:$16 sps:$4 sm:$0xff]  }
  0xa7   :  { %2530 = vmatpush1.bf16.msra.mxu0 %v4085_v12  ;;  %2788 = vmatpush1.bf16.msra.mxu1 %v4088_v13  ;;  %v4270_v12 = vld [vmem:[#allocation3 + $0x14] ss:$48 sps:$4 sm:$0xff]  }
  0xa8   :  { %2531 = vmatprep.subr.bf16.mxu0 %v4093_v14  ;;  %2789 = vmatprep.subr.bf16.mxu1 %v4096_v15  ;;  %v4186_v13 = vld [vmem:[#allocation6 + $0x444] ss:$16 sps:$4 sm:$0xff]   ;;  %v4189_v14 = vld [vmem:[#allocation6 + $0x44c] ss:$16 sps:$4 sm:$0xff]   ;;  %v4184_v15 = vld [vmem:[#allocation6 + $0x440] ss:$16 sps:$4 sm:$0xff]  }
  0xab   :  { %2532 = vmatpush1.bf16.msra.mxu0 %v4091_v16  ;;  %2790 = vmatpush1.bf16.msra.mxu1 %v4094_v17  ;;  %v4187_v16 = vld [vmem:[#allocation6 + $0x448] ss:$16 sps:$4 sm:$0xff]   ;;  %v4192_v17 = vld [vmem:[#allocation6 + $0x464] ss:$16 sps:$4 sm:$0xff]  }
  0xac   :  { %2533 = vmatprep.subr.bf16.mxu0 %v4099_v18  ;;  %2791 = vmatprep.subr.bf16.mxu1 %v4102_v19  ;;  %v4195_v18 = vld [vmem:[#allocation6 + $0x46c] ss:$16 sps:$4 sm:$0xff]   ;;  %v4190_v19 = vld [vmem:[#allocation6 + $0x460] ss:$16 sps:$4 sm:$0xff]  }
  0xaf   :  { %2534 = vmatpush1.bf16.msra.mxu0 %v4097_v20  ;;  %2792 = vmatpush1.bf16.msra.mxu1 %v4100_v21  ;;  %v4193_v20 = vld [vmem:[#allocation6 + $0x468] ss:$16 sps:$4 sm:$0xff]   ;;  %v4198_v21 = vld [vmem:[#allocation6 + $0x484] ss:$16 sps:$4 sm:$0xff]  }
  0xb0   :  { %2535 = vmatprep.subr.bf16.mxu0 %v4105_v22  ;;  %2793 = vmatprep.subr.bf16.mxu1 %v4108_v23  ;;  %v4201_v22 = vld [vmem:[#allocation6 + $0x48c] ss:$16 sps:$4 sm:$0xff]   ;;  %v4196_v23 = vld [vmem:[#allocation6 + $0x480] ss:$16 sps:$4 sm:$0xff]  }
  0xb3   :  { %2536 = vmatpush1.bf16.msra.mxu0 %v4103_v24  ;;  %2794 = vmatpush1.bf16.msra.mxu1 %v4106_v25  ;;  %v4199_v24 = vld [vmem:[#allocation6 + $0x488] ss:$16 sps:$4 sm:$0xff]   ;;  %v4204_v25 = vld [vmem:[#allocation6 + $0x4a4] ss:$16 sps:$4 sm:$0xff]  }
  0xb4   :  { %2537 = vmatprep.subr.bf16.mxu0 %v4111_v26  ;;  %2795 = vmatprep.subr.bf16.mxu1 %v4114_v27  ;;  %v4207_v26 = vld [vmem:[#allocation6 + $0x4ac] ss:$16 sps:$4 sm:$0xff]   ;;  %v4202_v27 = vld [vmem:[#allocation6 + $0x4a0] ss:$16 sps:$4 sm:$0xff]  }
  0xb7   :  { %2538 = vmatpush1.bf16.msra.mxu0 %v4109_v28  ;;  %2796 = vmatpush1.bf16.msra.mxu1 %v4112_v29  ;;  %v4205_v28 = vld [vmem:[#allocation6 + $0x4a8] ss:$16 sps:$4 sm:$0xff]   ;;  %v4210_v29 = vld [vmem:[#allocation6 + $0x4c4] ss:$16 sps:$4 sm:$0xff]  }
  0xb8   :  { %2539 = vmatprep.subr.bf16.mxu0 %v4117_v31  ;;  %2797 = vmatprep.subr.bf16.mxu1 %v4120_v32  ;;  %v4208_v31 = vld [vmem:[#allocation6 + $0x4c0] ss:$16 sps:$4 sm:$0xff]   ;;  %v4211_v32 = vld [vmem:[#allocation6 + $0x4c8] ss:$16 sps:$4 sm:$0xff]  }
  0xbb   :  { %2540 = vmatpush1.bf16.msra.mxu0 %v4115_v33  ;;  %2798 = vmatpush1.bf16.msra.mxu1 %v4118_v34  ;;  %v4216_v33 = vld [vmem:[#allocation6 + $0x4e4] ss:$16 sps:$4 sm:$0xff]   ;;  %v4219_v34 = vld [vmem:[#allocation6 + $0x4ec] ss:$16 sps:$4 sm:$0xff]  }
  0xbc   :  { %2541 = vmatprep.subr.bf16.mxu0 %v4123_v35  ;;  %2799 = vmatprep.subr.bf16.mxu1 %v4126_v36  ;;  %v4214_v35 = vld [vmem:[#allocation6 + $0x4e0] ss:$16 sps:$4 sm:$0xff]   ;;  %v4217_v36 = vld [vmem:[#allocation6 + $0x4e8] ss:$16 sps:$4 sm:$0xff]  }
  0xbf   :  { %2542 = vmatpush1.bf16.msra.mxu0 %v4121_v37  ;;  %2800 = vmatpush1.bf16.msra.mxu1 %v4124_v38  ;;  %v4222_v37 = vld [vmem:[#allocation6 + $0x504] ss:$16 sps:$4 sm:$0xff]   ;;  %v4225_v38 = vld [vmem:[#allocation6 + $0x50c] ss:$16 sps:$4 sm:$0xff]  }
  0xc0   :  { %2543 = vmatprep.subr.bf16.mxu0 %v4129_v39  ;;  %2801 = vmatprep.subr.bf16.mxu1 %v4132_v40  ;;  %v4220_v39 = vld [vmem:[#allocation6 + $0x500] ss:$16 sps:$4 sm:$0xff]   ;;  %v4223_v40 = vld [vmem:[#allocation6 + $0x508] ss:$16 sps:$4 sm:$0xff]  }
  0xc3   :  { %2544 = vmatpush1.bf16.msra.mxu0 %v4127_v41  ;;  %2802 = vmatpush1.bf16.msra.mxu1 %v4130_v42  ;;  %v4228_v41 = vld [vmem:[#allocation6 + $0x524] ss:$16 sps:$4 sm:$0xff]   ;;  %v4231_v42 = vld [vmem:[#allocation6 + $0x52c] ss:$16 sps:$4 sm:$0xff]  }
  0xc4   :  { %2545 = vmatprep.subr.bf16.mxu0 %v4135_v43  ;;  %2803 = vmatprep.subr.bf16.mxu1 %v4138_v44  ;;  %v4226_v43 = vld [vmem:[#allocation6 + $0x520] ss:$16 sps:$4 sm:$0xff]   ;;  %v4229_v44 = vld [vmem:[#allocation6 + $0x528] ss:$16 sps:$4 sm:$0xff]  }
  0xc7   :  { %2546 = vmatpush1.bf16.msra.mxu0 %v4133_v45  ;;  %2804 = vmatpush1.bf16.msra.mxu1 %v4136_v46  ;;  %v4234_v45 = vld [vmem:[#allocation6 + $0x544] ss:$16 sps:$4 sm:$0xff]   ;;  %v4237_v46 = vld [vmem:[#allocation6 + $0x54c] ss:$16 sps:$4 sm:$0xff]  }
  0xc8   :  { %2547 = vmatprep.subr.bf16.mxu0 %v4141_v47  ;;  %2805 = vmatprep.subr.bf16.mxu1 %v4144_v48  ;;  %v4232_v47 = vld [vmem:[#allocation6 + $0x540] ss:$16 sps:$4 sm:$0xff]   ;;  %v4235_v48 = vld [vmem:[#allocation6 + $0x548] ss:$16 sps:$4 sm:$0xff]  }
  0xcb   :  { %2548 = vmatpush1.bf16.msra.mxu0 %v4139_v49  ;;  %2806 = vmatpush1.bf16.msra.mxu1 %v4142_v50  ;;  %v4240_v49 = vld [vmem:[#allocation6 + $0x564] ss:$16 sps:$4 sm:$0xff]   ;;  %v4243_v50 = vld [vmem:[#allocation6 + $0x56c] ss:$16 sps:$4 sm:$0xff]  }
  0xcc   :  { %2549 = vmatprep.subr.bf16.mxu0 %v4147_v51  ;;  %2807 = vmatprep.subr.bf16.mxu1 %v4150_v52  ;;  %v4238_v51 = vld [vmem:[#allocation6 + $0x560] ss:$16 sps:$4 sm:$0xff]   ;;  %v4241_v52 = vld [vmem:[#allocation6 + $0x568] ss:$16 sps:$4 sm:$0xff]  }
  0xcf   :  { %2550 = vmatpush1.bf16.msra.mxu0 %v4145_v53  ;;  %2808 = vmatpush1.bf16.msra.mxu1 %v4148_v54  ;;  %v4246_v53 = vld [vmem:[#allocation6 + $0x584] ss:$16 sps:$4 sm:$0xff]   ;;  %v4249_v54 = vld [vmem:[#allocation6 + $0x58c] ss:$16 sps:$4 sm:$0xff]  }
  0xd0   :  { %2551 = vmatprep.subr.bf16.mxu0 %v4153_v55  ;;  %2809 = vmatprep.subr.bf16.mxu1 %v4156_v56  ;;  %v4244_v55 = vld [vmem:[#allocation6 + $0x580] ss:$16 sps:$4 sm:$0xff]   ;;  %v4247_v56 = vld [vmem:[#allocation6 + $0x588] ss:$16 sps:$4 sm:$0xff]  }
  0xd3   :  { %2552 = vmatpush1.bf16.msra.mxu0 %v4151_v57  ;;  %2810 = vmatpush1.bf16.msra.mxu1 %v4154_v58  ;;  %v4252_v57 = vld [vmem:[#allocation6 + $0x5a4] ss:$16 sps:$4 sm:$0xff]   ;;  %v4255_v58 = vld [vmem:[#allocation6 + $0x5ac] ss:$16 sps:$4 sm:$0xff]  }
  0xd4   :  { %2553 = vmatprep.subr.bf16.mxu0 %v4159_v59  ;;  %2811 = vmatprep.subr.bf16.mxu1 %v4162_v60  ;;  %v4250_v59 = vld [vmem:[#allocation6 + $0x5a0] ss:$16 sps:$4 sm:$0xff]   ;;  %v4253_v60 = vld [vmem:[#allocation6 + $0x5a8] ss:$16 sps:$4 sm:$0xff]  }
  0xd7   :  { %2554 = vmatpush1.bf16.msra.mxu0 %v4157_v61  ;;  %2812 = vmatpush1.bf16.msra.mxu1 %v4160_v62  ;;  %v4258_v61 = vld [vmem:[#allocation6 + $0x5c4] ss:$16 sps:$4 sm:$0xff]   ;;  %v4261_v62 = vld [vmem:[#allocation6 + $0x5cc] ss:$16 sps:$4 sm:$0xff]  }
  0xd8   :  { %2555 = vmatprep.subr.bf16.mxu0 %v4165_v63  ;;  %2813 = vmatprep.subr.bf16.mxu1 %v4168_v0  ;;  %v4256_v63 = vld [vmem:[#allocation6 + $0x5c0] ss:$16 sps:$4 sm:$0xff]   ;;  %v4259_v0 = vld [vmem:[#allocation6 + $0x5c8] ss:$16 sps:$4 sm:$0xff]  }
  0xdb   :  { %2556 = vmatpush1.bf16.msra.mxu0 %v4163_v1  ;;  %2814 = vmatpush1.bf16.msra.mxu1 %v4166_v2  ;;  %v4264_v1 = vld [vmem:[#allocation6 + $0x5e4] ss:$16 sps:$4 sm:$0xff]   ;;  %v4267_v2 = vld [vmem:[#allocation6 + $0x5ec] ss:$16 sps:$4 sm:$0xff]  }
  0xdc   :  { %2568 = vmatprep.subr.bf16.mxu0 %v4174_v3  ;;  %2826 = vmatprep.subr.bf16.mxu1 %v4177_v4  ;;  %v4262_v3 = vld [vmem:[#allocation6 + $0x5e0] ss:$16 sps:$4 sm:$0xff]   ;;  %v4265_v4 = vld [vmem:[#allocation6 + $0x5e8] ss:$16 sps:$4 sm:$0xff]  }
  0xde   :  { %2558 = vmatmul.mubr.bf16.vlgmr.msra.gmra.mrb[0].mxu0 %v4169_v5  ;;  %2816 = vmatmul.mubr.bf16.vlgmr.msra.gmra.mrb[0].mxu1 %v4169_v5  ;;  %v4273_v5 = vld [vmem:[#allocation6 + $0x604] ss:$16 sps:$4 sm:$0xff]  }
  0xdf   :  { %2569 = vmatpush1.bf16.msra.mxu0 %v4172_v6  ;;  %2827 = vmatpush1.bf16.msra.mxu1 %v4175_v7  ;;  %v4276_v6 = vld [vmem:[#allocation6 + $0x60c] ss:$16 sps:$4 sm:$0xff]   ;;  %v4268_v7 = vld [vmem:[#allocation3 + $0x10] ss:$48 sps:$4 sm:$0xff]  }
  0xe0   :  { %2570 = vmatprep.subr.bf16.mxu0 %v4180_v8  ;;  %2828 = vmatprep.subr.bf16.mxu1 %v4183_v9  ;;  %v4271_v8 = vld [vmem:[#allocation6 + $0x600] ss:$16 sps:$4 sm:$0xff]   ;;  %v4274_v9 = vld [vmem:[#allocation6 + $0x608] ss:$16 sps:$4 sm:$0xff]  }
  0xe1   :  { %2600 = vmatprep.mubr.bf16.mxu0 %v4270_v12  ;;  %2858 = vmatprep.mubr.bf16.mxu1 %v4270_v12  ;;  %v4369_v12 = vld [vmem:[#allocation3 + $0x1c] ss:$48 sps:$4 sm:$0xff]  }
  0xe3   :  { %2571 = vmatpush1.bf16.msra.mxu0 %v4178_v10  ;;  %2829 = vmatpush1.bf16.msra.mxu1 %v4181_v11  ;;  %v4279_v10 = vld [vmem:[#allocation6 + $0x624] ss:$16 sps:$4 sm:$0xff]   ;;  %v4282_v11 = vld [vmem:[#allocation6 + $0x62c] ss:$16 sps:$4 sm:$0xff]  }
  0xe4   :  { %2572 = vmatprep.subr.bf16.mxu0 %v4186_v13  ;;  %2830 = vmatprep.subr.bf16.mxu1 %v4189_v14  ;;  %v4277_v13 = vld [vmem:[#allocation6 + $0x620] ss:$16 sps:$4 sm:$0xff]   ;;  %v4280_v14 = vld [vmem:[#allocation6 + $0x628] ss:$16 sps:$4 sm:$0xff]  }
  0xe7   :  { %2573 = vmatpush1.bf16.msra.mxu0 %v4184_v15  ;;  %2831 = vmatpush1.bf16.msra.mxu1 %v4187_v16  ;;  %v4285_v15 = vld [vmem:[#allocation6 + $0x644] ss:$16 sps:$4 sm:$0xff]   ;;  %v4288_v16 = vld [vmem:[#allocation6 + $0x64c] ss:$16 sps:$4 sm:$0xff]  }
  0xe8   :  { %2574 = vmatprep.subr.bf16.mxu0 %v4192_v17  ;;  %2832 = vmatprep.subr.bf16.mxu1 %v4195_v18  ;;  %v4283_v17 = vld [vmem:[#allocation6 + $0x640] ss:$16 sps:$4 sm:$0xff]   ;;  %v4286_v18 = vld [vmem:[#allocation6 + $0x648] ss:$16 sps:$4 sm:$0xff]  }
  0xeb   :  { %2575 = vmatpush1.bf16.msra.mxu0 %v4190_v19  ;;  %2833 = vmatpush1.bf16.msra.mxu1 %v4193_v20  ;;  %v4291_v19 = vld [vmem:[#allocation6 + $0x664] ss:$16 sps:$4 sm:$0xff]   ;;  %v4294_v20 = vld [vmem:[#allocation6 + $0x66c] ss:$16 sps:$4 sm:$0xff]  }
  0xec   :  { %2576 = vmatprep.subr.bf16.mxu0 %v4198_v21  ;;  %2834 = vmatprep.subr.bf16.mxu1 %v4201_v22  ;;  %v4289_v21 = vld [vmem:[#allocation6 + $0x660] ss:$16 sps:$4 sm:$0xff]   ;;  %v4292_v22 = vld [vmem:[#allocation6 + $0x668] ss:$16 sps:$4 sm:$0xff]  }
  0xef   :  { %2577 = vmatpush1.bf16.msra.mxu0 %v4196_v23  ;;  %2835 = vmatpush1.bf16.msra.mxu1 %v4199_v24  ;;  %v4297_v23 = vld [vmem:[#allocation6 + $0x684] ss:$16 sps:$4 sm:$0xff]   ;;  %v4300_v24 = vld [vmem:[#allocation6 + $0x68c] ss:$16 sps:$4 sm:$0xff]  }
  0xf0   :  { %2578 = vmatprep.subr.bf16.mxu0 %v4204_v25  ;;  %2836 = vmatprep.subr.bf16.mxu1 %v4207_v26  ;;  %v4295_v25 = vld [vmem:[#allocation6 + $0x680] ss:$16 sps:$4 sm:$0xff]   ;;  %v4298_v26 = vld [vmem:[#allocation6 + $0x688] ss:$16 sps:$4 sm:$0xff]  }
  0xf3   :  { %2579 = vmatpush1.bf16.msra.mxu0 %v4202_v27  ;;  %2837 = vmatpush1.bf16.msra.mxu1 %v4205_v28  ;;  %v4303_v27 = vld [vmem:[#allocation6 + $0x6a4] ss:$16 sps:$4 sm:$0xff]   ;;  %v4306_v28 = vld [vmem:[#allocation6 + $0x6ac] ss:$16 sps:$4 sm:$0xff]  }
  0xf4   :  { %2580 = vmatprep.subr.bf16.mxu0 %v4210_v29  ;;  %2838 = vmatprep.subr.bf16.mxu1 %v4213_v30  ;;  %v4301_v29 = vld [vmem:[#allocation6 + $0x6a0] ss:$16 sps:$4 sm:$0xff]   ;;  %v4304_v30 = vld [vmem:[#allocation6 + $0x6a8] ss:$16 sps:$4 sm:$0xff]  }
  0xf7   :  { %2581 = vmatpush1.bf16.msra.mxu0 %v4208_v31  ;;  %2839 = vmatpush1.bf16.msra.mxu1 %v4211_v32  ;;  %v4309_v31 = vld [vmem:[#allocation6 + $0x6c4] ss:$16 sps:$4 sm:$0xff]   ;;  %v4312_v32 = vld [vmem:[#allocation6 + $0x6cc] ss:$16 sps:$4 sm:$0xff]  }
  0xf8   :  { %2582 = vmatprep.subr.bf16.mxu0 %v4216_v33  ;;  %2840 = vmatprep.subr.bf16.mxu1 %v4219_v34  ;;  %v4307_v33 = vld [vmem:[#allocation6 + $0x6c0] ss:$16 sps:$4 sm:$0xff]   ;;  %v4310_v34 = vld [vmem:[#allocation6 + $0x6c8] ss:$16 sps:$4 sm:$0xff]  }
  0xfb   :  { %2583 = vmatpush1.bf16.msra.mxu0 %v4214_v35  ;;  %2841 = vmatpush1.bf16.msra.mxu1 %v4217_v36  ;;  %v4315_v35 = vld [vmem:[#allocation6 + $0x6e4] ss:$16 sps:$4 sm:$0xff]   ;;  %v4318_v36 = vld [vmem:[#allocation6 + $0x6ec] ss:$16 sps:$4 sm:$0xff]  }
  0xfc   :  { %2584 = vmatprep.subr.bf16.mxu0 %v4222_v37  ;;  %2842 = vmatprep.subr.bf16.mxu1 %v4225_v38  ;;  %v4313_v37 = vld [vmem:[#allocation6 + $0x6e0] ss:$16 sps:$4 sm:$0xff]   ;;  %v4316_v38 = vld [vmem:[#allocation6 + $0x6e8] ss:$16 sps:$4 sm:$0xff]  }
  0xff   :  { %2585 = vmatpush1.bf16.msra.mxu0 %v4220_v39  ;;  %2843 = vmatpush1.bf16.msra.mxu1 %v4223_v40  ;;  %v4321_v39 = vld [vmem:[#allocation6 + $0x704] ss:$16 sps:$4 sm:$0xff]   ;;  %v4324_v40 = vld [vmem:[#allocation6 + $0x70c] ss:$16 sps:$4 sm:$0xff]  }
 0x100   :  { %2586 = vmatprep.subr.bf16.mxu0 %v4228_v41  ;;  %2844 = vmatprep.subr.bf16.mxu1 %v4231_v42  ;;  %v4319_v41 = vld [vmem:[#allocation6 + $0x700] ss:$16 sps:$4 sm:$0xff]   ;;  %v4322_v42 = vld [vmem:[#allocation6 + $0x708] ss:$16 sps:$4 sm:$0xff]  }
 0x103   :  { %2587 = vmatpush1.bf16.msra.mxu0 %v4226_v43  ;;  %2845 = vmatpush1.bf16.msra.mxu1 %v4229_v44  ;;  %v4327_v43 = vld [vmem:[#allocation6 + $0x724] ss:$16 sps:$4 sm:$0xff]   ;;  %v4330_v44 = vld [vmem:[#allocation6 + $0x72c] ss:$16 sps:$4 sm:$0xff]  }
 0x104   :  { %2588 = vmatprep.subr.bf16.mxu0 %v4234_v45  ;;  %2846 = vmatprep.subr.bf16.mxu1 %v4237_v46  ;;  %v4325_v45 = vld [vmem:[#allocation6 + $0x720] ss:$16 sps:$4 sm:$0xff]   ;;  %v4328_v46 = vld [vmem:[#allocation6 + $0x728] ss:$16 sps:$4 sm:$0xff]  }
 0x107   :  { %2589 = vmatpush1.bf16.msra.mxu0 %v4232_v47  ;;  %2847 = vmatpush1.bf16.msra.mxu1 %v4235_v48  ;;  %v4333_v47 = vld [vmem:[#allocation6 + $0x744] ss:$16 sps:$4 sm:$0xff]   ;;  %v4336_v48 = vld [vmem:[#allocation6 + $0x74c] ss:$16 sps:$4 sm:$0xff]  }
 0x108   :  { %2590 = vmatprep.subr.bf16.mxu0 %v4240_v49  ;;  %2848 = vmatprep.subr.bf16.mxu1 %v4243_v50  ;;  %v4331_v49 = vld [vmem:[#allocation6 + $0x740] ss:$16 sps:$4 sm:$0xff]   ;;  %v4334_v50 = vld [vmem:[#allocation6 + $0x748] ss:$16 sps:$4 sm:$0xff]  }
 0x10b   :  { %2591 = vmatpush1.bf16.msra.mxu0 %v4238_v51  ;;  %2849 = vmatpush1.bf16.msra.mxu1 %v4241_v52  ;;  %v4339_v51 = vld [vmem:[#allocation6 + $0x764] ss:$16 sps:$4 sm:$0xff]   ;;  %v4342_v52 = vld [vmem:[#allocation6 + $0x76c] ss:$16 sps:$4 sm:$0xff]  }
 0x10c   :  { %2592 = vmatprep.subr.bf16.mxu0 %v4246_v53  ;;  %2850 = vmatprep.subr.bf16.mxu1 %v4249_v54  ;;  %v4337_v53 = vld [vmem:[#allocation6 + $0x760] ss:$16 sps:$4 sm:$0xff]   ;;  %v4340_v54 = vld [vmem:[#allocation6 + $0x768] ss:$16 sps:$4 sm:$0xff]  }
 0x10f   :  { %2593 = vmatpush1.bf16.msra.mxu0 %v4244_v55  ;;  %2851 = vmatpush1.bf16.msra.mxu1 %v4247_v56  ;;  %v4345_v55 = vld [vmem:[#allocation6 + $0x784] ss:$16 sps:$4 sm:$0xff]   ;;  %v4348_v56 = vld [vmem:[#allocation6 + $0x78c] ss:$16 sps:$4 sm:$0xff]  }
 0x110   :  { %2594 = vmatprep.subr.bf16.mxu0 %v4252_v57  ;;  %2852 = vmatprep.subr.bf16.mxu1 %v4255_v58  ;;  %v4343_v57 = vld [vmem:[#allocation6 + $0x780] ss:$16 sps:$4 sm:$0xff]   ;;  %v4346_v58 = vld [vmem:[#allocation6 + $0x788] ss:$16 sps:$4 sm:$0xff]  }
 0x113   :  { %2595 = vmatpush1.bf16.msra.mxu0 %v4250_v59  ;;  %2853 = vmatpush1.bf16.msra.mxu1 %v4253_v60  ;;  %v4351_v59 = vld [vmem:[#allocation6 + $0x7a4] ss:$16 sps:$4 sm:$0xff]   ;;  %v4354_v60 = vld [vmem:[#allocation6 + $0x7ac] ss:$16 sps:$4 sm:$0xff]  }
 0x114   :  { %2596 = vmatprep.subr.bf16.mxu0 %v4258_v61  ;;  %2854 = vmatprep.subr.bf16.mxu1 %v4261_v62  ;;  %v4349_v61 = vld [vmem:[#allocation6 + $0x7a0] ss:$16 sps:$4 sm:$0xff]   ;;  %v4352_v62 = vld [vmem:[#allocation6 + $0x7a8] ss:$16 sps:$4 sm:$0xff]  }
 0x117   :  { %2597 = vmatpush1.bf16.msra.mxu0 %v4256_v63  ;;  %2855 = vmatpush1.bf16.msra.mxu1 %v4259_v0  ;;  %v4357_v63 = vld [vmem:[#allocation6 + $0x7c4] ss:$16 sps:$4 sm:$0xff]   ;;  %v4360_v0 = vld [vmem:[#allocation6 + $0x7cc] ss:$16 sps:$4 sm:$0xff]  }
 0x118   :  { %2598 = vmatprep.subr.bf16.mxu0 %v4264_v1  ;;  %2856 = vmatprep.subr.bf16.mxu1 %v4267_v2  ;;  %v4355_v1 = vld [vmem:[#allocation6 + $0x7c0] ss:$16 sps:$4 sm:$0xff]   ;;  %v4358_v2 = vld [vmem:[#allocation6 + $0x7c8] ss:$16 sps:$4 sm:$0xff]  }
 0x11b   :  { %2599 = vmatpush1.bf16.msra.mxu0 %v4262_v3  ;;  %2857 = vmatpush1.bf16.msra.mxu1 %v4265_v4  ;;  %v4363_v3 = vld [vmem:[#allocation6 + $0x7e4] ss:$16 sps:$4 sm:$0xff]   ;;  %v4366_v4 = vld [vmem:[#allocation6 + $0x7ec] ss:$16 sps:$4 sm:$0xff]  }
 0x11c   :  { %2611 = vmatprep.subr.bf16.mxu0 %v4273_v5  ;;  %2869 = vmatprep.subr.bf16.mxu1 %v4276_v6  ;;  %v4361_v5 = vld [vmem:[#allocation6 + $0x7e0] ss:$16 sps:$4 sm:$0xff]   ;;  %v4364_v6 = vld [vmem:[#allocation6 + $0x7e8] ss:$16 sps:$4 sm:$0xff]  }
 0x11e   :  { %2601 = vmatmul.mubr.bf16.vlgmr.msra.gmra.mrb[0].mxu0 %v4268_v7  ;;  %2859 = vmatmul.mubr.bf16.vlgmr.msra.gmra.mrb[0].mxu1 %v4268_v7  ;;  %v4372_v7 = vld [vmem:[#allocation6 + $0x804] ss:$16 sps:$4 sm:$0xff]  }
 0x11f   :  { %2612 = vmatpush1.bf16.msra.mxu0 %v4271_v8  ;;  %2870 = vmatpush1.bf16.msra.mxu1 %v4274_v9  ;;  %v4375_v8 = vld [vmem:[#allocation6 + $0x80c] ss:$16 sps:$4 sm:$0xff]   ;;  %v4367_v9 = vld [vmem:[#allocation3 + $0x18] ss:$48 sps:$4 sm:$0xff]  }
 0x120   :  { %2613 = vmatprep.subr.bf16.mxu0 %v4279_v10  ;;  %2871 = vmatprep.subr.bf16.mxu1 %v4282_v11  ;;  %v4370_v10 = vld [vmem:[#allocation6 + $0x800] ss:$16 sps:$4 sm:$0xff]   ;;  %v4373_v11 = vld [vmem:[#allocation6 + $0x808] ss:$16 sps:$4 sm:$0xff]  }
 0x121   :  { %2643 = vmatprep.mubr.bf16.mxu0 %v4369_v12  ;;  %2901 = vmatprep.mubr.bf16.mxu1 %v4369_v12  ;;  %v4378_v12 = vld [vmem:[#allocation6 + $0x824] ss:$16 sps:$4 sm:$0xff]  }
 0x123   :  { %2614 = vmatpush1.bf16.msra.mxu0 %v4277_v13  ;;  %2872 = vmatpush1.bf16.msra.mxu1 %v4280_v14  ;;  %v4381_v13 = vld [vmem:[#allocation6 + $0x82c] ss:$16 sps:$4 sm:$0xff]   ;;  %v4468_v14 = vld [vmem:[#allocation3 + $0x24] ss:$48 sps:$4 sm:$0xff]  }
 0x124   :  { %2615 = vmatprep.subr.bf16.mxu0 %v4285_v15  ;;  %2873 = vmatprep.subr.bf16.mxu1 %v4288_v16  ;;  %v4376_v15 = vld [vmem:[#allocation6 + $0x820] ss:$16 sps:$4 sm:$0xff]   ;;  %v4379_v16 = vld [vmem:[#allocation6 + $0x828] ss:$16 sps:$4 sm:$0xff]  }
 0x127   :  { %2616 = vmatpush1.bf16.msra.mxu0 %v4283_v17  ;;  %2874 = vmatpush1.bf16.msra.mxu1 %v4286_v18  ;;  %v4384_v17 = vld [vmem:[#allocation6 + $0x844] ss:$16 sps:$4 sm:$0xff]   ;;  %v4387_v18 = vld [vmem:[#allocation6 + $0x84c] ss:$16 sps:$4 sm:$0xff]  }
 0x128   :  { %2617 = vmatprep.subr.bf16.mxu0 %v4291_v19  ;;  %2875 = vmatprep.subr.bf16.mxu1 %v4294_v20  ;;  %v4382_v19 = vld [vmem:[#allocation6 + $0x840] ss:$16 sps:$4 sm:$0xff]   ;;  %v4385_v20 = vld [vmem:[#allocation6 + $0x848] ss:$16 sps:$4 sm:$0xff]  }
 0x12b   :  { %2618 = vmatpush1.bf16.msra.mxu0 %v4289_v21  ;;  %2876 = vmatpush1.bf16.msra.mxu1 %v4292_v22  ;;  %v4390_v21 = vld [vmem:[#allocation6 + $0x864] ss:$16 sps:$4 sm:$0xff]   ;;  %v4393_v22 = vld [vmem:[#allocation6 + $0x86c] ss:$16 sps:$4 sm:$0xff]  }
 0x12c   :  { %2619 = vmatprep.subr.bf16.mxu0 %v4297_v23  ;;  %2877 = vmatprep.subr.bf16.mxu1 %v4300_v24  ;;  %v4388_v23 = vld [vmem:[#allocation6 + $0x860] ss:$16 sps:$4 sm:$0xff]   ;;  %v4391_v24 = vld [vmem:[#allocation6 + $0x868] ss:$16 sps:$4 sm:$0xff]  }
 0x12f   :  { %2620 = vmatpush1.bf16.msra.mxu0 %v4295_v25  ;;  %2878 = vmatpush1.bf16.msra.mxu1 %v4298_v26  ;;  %v4396_v25 = vld [vmem:[#allocation6 + $0x884] ss:$16 sps:$4 sm:$0xff]   ;;  %v4399_v26 = vld [vmem:[#allocation6 + $0x88c] ss:$16 sps:$4 sm:$0xff]  }
 0x130   :  { %2621 = vmatprep.subr.bf16.mxu0 %v4303_v27  ;;  %2879 = vmatprep.subr.bf16.mxu1 %v4306_v28  ;;  %v4394_v27 = vld [vmem:[#allocation6 + $0x880] ss:$16 sps:$4 sm:$0xff]   ;;  %v4397_v28 = vld [vmem:[#allocation6 + $0x888] ss:$16 sps:$4 sm:$0xff]  }
 0x133   :  { %2622 = vmatpush1.bf16.msra.mxu0 %v4301_v29  ;;  %2880 = vmatpush1.bf16.msra.mxu1 %v4304_v30  ;;  %v4402_v29 = vld [vmem:[#allocation6 + $0x8a4] ss:$16 sps:$4 sm:$0xff]   ;;  %v4405_v30 = vld [vmem:[#allocation6 + $0x8ac] ss:$16 sps:$4 sm:$0xff]  }
 0x134   :  { %2623 = vmatprep.subr.bf16.mxu0 %v4309_v31  ;;  %2881 = vmatprep.subr.bf16.mxu1 %v4312_v32  ;;  %v4400_v31 = vld [vmem:[#allocation6 + $0x8a0] ss:$16 sps:$4 sm:$0xff]   ;;  %v4403_v32 = vld [vmem:[#allocation6 + $0x8a8] ss:$16 sps:$4 sm:$0xff]  }
 0x137   :  { %2624 = vmatpush1.bf16.msra.mxu0 %v4307_v33  ;;  %2882 = vmatpush1.bf16.msra.mxu1 %v4310_v34  ;;  %v4408_v33 = vld [vmem:[#allocation6 + $0x8c4] ss:$16 sps:$4 sm:$0xff]   ;;  %v4411_v34 = vld [vmem:[#allocation6 + $0x8cc] ss:$16 sps:$4 sm:$0xff]  }
 0x138   :  { %2625 = vmatprep.subr.bf16.mxu0 %v4315_v35  ;;  %2883 = vmatprep.subr.bf16.mxu1 %v4318_v36  ;;  %v4406_v35 = vld [vmem:[#allocation6 + $0x8c0] ss:$16 sps:$4 sm:$0xff]   ;;  %v4409_v36 = vld [vmem:[#allocation6 + $0x8c8] ss:$16 sps:$4 sm:$0xff]  }
 0x13b   :  { %2626 = vmatpush1.bf16.msra.mxu0 %v4313_v37  ;;  %2884 = vmatpush1.bf16.msra.mxu1 %v4316_v38  ;;  %v4414_v37 = vld [vmem:[#allocation6 + $0x8e4] ss:$16 sps:$4 sm:$0xff]   ;;  %v4417_v38 = vld [vmem:[#allocation6 + $0x8ec] ss:$16 sps:$4 sm:$0xff]  }
 0x13c   :  { %2627 = vmatprep.subr.bf16.mxu0 %v4321_v39  ;;  %2885 = vmatprep.subr.bf16.mxu1 %v4324_v40  ;;  %v4412_v39 = vld [vmem:[#allocation6 + $0x8e0] ss:$16 sps:$4 sm:$0xff]   ;;  %v4415_v40 = vld [vmem:[#allocation6 + $0x8e8] ss:$16 sps:$4 sm:$0xff]  }
 0x13f   :  { %2628 = vmatpush1.bf16.msra.mxu0 %v4319_v41  ;;  %2886 = vmatpush1.bf16.msra.mxu1 %v4322_v42  ;;  %v4420_v41 = vld [vmem:[#allocation6 + $0x904] ss:$16 sps:$4 sm:$0xff]   ;;  %v4423_v42 = vld [vmem:[#allocation6 + $0x90c] ss:$16 sps:$4 sm:$0xff]  }
 0x140   :  { %2629 = vmatprep.subr.bf16.mxu0 %v4327_v43  ;;  %2887 = vmatprep.subr.bf16.mxu1 %v4330_v44  ;;  %v4418_v43 = vld [vmem:[#allocation6 + $0x900] ss:$16 sps:$4 sm:$0xff]   ;;  %v4421_v44 = vld [vmem:[#allocation6 + $0x908] ss:$16 sps:$4 sm:$0xff]  }
 0x143   :  { %2630 = vmatpush1.bf16.msra.mxu0 %v4325_v45  ;;  %2888 = vmatpush1.bf16.msra.mxu1 %v4328_v46  ;;  %v4426_v45 = vld [vmem:[#allocation6 + $0x924] ss:$16 sps:$4 sm:$0xff]   ;;  %v4429_v46 = vld [vmem:[#allocation6 + $0x92c] ss:$16 sps:$4 sm:$0xff]  }
 0x144   :  { %2631 = vmatprep.subr.bf16.mxu0 %v4333_v47  ;;  %2889 = vmatprep.subr.bf16.mxu1 %v4336_v48  ;;  %v4424_v47 = vld [vmem:[#allocation6 + $0x920] ss:$16 sps:$4 sm:$0xff]   ;;  %v4427_v48 = vld [vmem:[#allocation6 + $0x928] ss:$16 sps:$4 sm:$0xff]  }
 0x147   :  { %2632 = vmatpush1.bf16.msra.mxu0 %v4331_v49  ;;  %2890 = vmatpush1.bf16.msra.mxu1 %v4334_v50  ;;  %v4432_v49 = vld [vmem:[#allocation6 + $0x944] ss:$16 sps:$4 sm:$0xff]   ;;  %v4435_v50 = vld [vmem:[#allocation6 + $0x94c] ss:$16 sps:$4 sm:$0xff]  }
 0x148   :  { %2633 = vmatprep.subr.bf16.mxu0 %v4339_v51  ;;  %2891 = vmatprep.subr.bf16.mxu1 %v4342_v52  ;;  %v4430_v51 = vld [vmem:[#allocation6 + $0x940] ss:$16 sps:$4 sm:$0xff]   ;;  %v4433_v52 = vld [vmem:[#allocation6 + $0x948] ss:$16 sps:$4 sm:$0xff]  }
 0x14b   :  { %2634 = vmatpush1.bf16.msra.mxu0 %v4337_v53  ;;  %2892 = vmatpush1.bf16.msra.mxu1 %v4340_v54  ;;  %v4438_v53 = vld [vmem:[#allocation6 + $0x964] ss:$16 sps:$4 sm:$0xff]   ;;  %v4441_v54 = vld [vmem:[#allocation6 + $0x96c] ss:$16 sps:$4 sm:$0xff]  }
 0x14c   :  { %2635 = vmatprep.subr.bf16.mxu0 %v4345_v55  ;;  %2893 = vmatprep.subr.bf16.mxu1 %v4348_v56  ;;  %v4436_v55 = vld [vmem:[#allocation6 + $0x960] ss:$16 sps:$4 sm:$0xff]   ;;  %v4439_v56 = vld [vmem:[#allocation6 + $0x968] ss:$16 sps:$4 sm:$0xff]  }
 0x14f   :  { %2636 = vmatpush1.bf16.msra.mxu0 %v4343_v57  ;;  %2894 = vmatpush1.bf16.msra.mxu1 %v4346_v58  ;;  %v4444_v57 = vld [vmem:[#allocation6 + $0x984] ss:$16 sps:$4 sm:$0xff]   ;;  %v4447_v58 = vld [vmem:[#allocation6 + $0x98c] ss:$16 sps:$4 sm:$0xff]  }
 0x150   :  { %2637 = vmatprep.subr.bf16.mxu0 %v4351_v59  ;;  %2895 = vmatprep.subr.bf16.mxu1 %v4354_v60  ;;  %v4442_v59 = vld [vmem:[#allocation6 + $0x980] ss:$16 sps:$4 sm:$0xff]   ;;  %v4445_v60 = vld [vmem:[#allocation6 + $0x988] ss:$16 sps:$4 sm:$0xff]  }
 0x153   :  { %2638 = vmatpush1.bf16.msra.mxu0 %v4349_v61  ;;  %2896 = vmatpush1.bf16.msra.mxu1 %v4352_v62  ;;  %v4450_v61 = vld [vmem:[#allocation6 + $0x9a4] ss:$16 sps:$4 sm:$0xff]   ;;  %v4453_v62 = vld [vmem:[#allocation6 + $0x9ac] ss:$16 sps:$4 sm:$0xff]  }
 0x154   :  { %2639 = vmatprep.subr.bf16.mxu0 %v4357_v63  ;;  %2897 = vmatprep.subr.bf16.mxu1 %v4360_v0  ;;  %v4448_v63 = vld [vmem:[#allocation6 + $0x9a0] ss:$16 sps:$4 sm:$0xff]   ;;  %v4451_v0 = vld [vmem:[#allocation6 + $0x9a8] ss:$16 sps:$4 sm:$0xff]  }
 0x157   :  { %2640 = vmatpush1.bf16.msra.mxu0 %v4355_v1  ;;  %2898 = vmatpush1.bf16.msra.mxu1 %v4358_v2  ;;  %v4456_v1 = vld [vmem:[#allocation6 + $0x9c4] ss:$16 sps:$4 sm:$0xff]   ;;  %v4459_v2 = vld [vmem:[#allocation6 + $0x9cc] ss:$16 sps:$4 sm:$0xff]  }
 0x158   :  { %2641 = vmatprep.subr.bf16.mxu0 %v4363_v3  ;;  %2899 = vmatprep.subr.bf16.mxu1 %v4366_v4  ;;  %v4454_v3 = vld [vmem:[#allocation6 + $0x9c0] ss:$16 sps:$4 sm:$0xff]   ;;  %v4457_v4 = vld [vmem:[#allocation6 + $0x9c8] ss:$16 sps:$4 sm:$0xff]  }
 0x15b   :  { %2642 = vmatpush1.bf16.msra.mxu0 %v4361_v5  ;;  %2900 = vmatpush1.bf16.msra.mxu1 %v4364_v6  ;;  %v4462_v5 = vld [vmem:[#allocation6 + $0x9e4] ss:$16 sps:$4 sm:$0xff]   ;;  %v4465_v6 = vld [vmem:[#allocation6 + $0x9ec] ss:$16 sps:$4 sm:$0xff]  }
 0x15c   :  { %2654 = vmatprep.subr.bf16.mxu0 %v4372_v7  ;;  %2912 = vmatprep.subr.bf16.mxu1 %v4375_v8  ;;  %v4460_v7 = vld [vmem:[#allocation6 + $0x9e0] ss:$16 sps:$4 sm:$0xff]   ;;  %v4463_v8 = vld [vmem:[#allocation6 + $0x9e8] ss:$16 sps:$4 sm:$0xff]  }
 0x15e   :  { %2644 = vmatmul.mubr.bf16.vlgmr.msra.gmra.mrb[0].mxu0 %v4367_v9  ;;  %2902 = vmatmul.mubr.bf16.vlgmr.msra.gmra.mrb[0].mxu1 %v4367_v9  ;;  %v4471_v9 = vld [vmem:[#allocation6 + $0xa04] ss:$16 sps:$4 sm:$0xff]  }
 0x15f   :  { %2655 = vmatpush1.bf16.msra.mxu0 %v4370_v10  ;;  %2913 = vmatpush1.bf16.msra.mxu1 %v4373_v11  ;;  %v4474_v10 = vld [vmem:[#allocation6 + $0xa0c] ss:$16 sps:$4 sm:$0xff]   ;;  %v4466_v11 = vld [vmem:[#allocation3 + $0x20] ss:$48 sps:$4 sm:$0xff]  }
 0x160   :  { %2656 = vmatprep.subr.bf16.mxu0 %v4378_v12  ;;  %2914 = vmatprep.subr.bf16.mxu1 %v4381_v13  ;;  %v4469_v12 = vld [vmem:[#allocation6 + $0xa00] ss:$16 sps:$4 sm:$0xff]   ;;  %v4472_v13 = vld [vmem:[#allocation6 + $0xa08] ss:$16 sps:$4 sm:$0xff]  }
 0x161   :  { %2686 = vmatprep.mubr.bf16.mxu0 %v4468_v14  ;;  %2944 = vmatprep.mubr.bf16.mxu1 %v4468_v14  ;;  %v4477_v14 = vld [vmem:[#allocation6 + $0xa24] ss:$16 sps:$4 sm:$0xff]  }
 0x163   :  { %2657 = vmatpush1.bf16.msra.mxu0 %v4376_v15  ;;  %2915 = vmatpush1.bf16.msra.mxu1 %v4379_v16  ;;  %v4480_v15 = vld [vmem:[#allocation6 + $0xa2c] ss:$16 sps:$4 sm:$0xff]  }
 0x164   :  { %2658 = vmatprep.subr.bf16.mxu0 %v4384_v17  ;;  %2916 = vmatprep.subr.bf16.mxu1 %v4387_v18  ;;  %v4567_v16 = vld [vmem:[#allocation3 + $0x2c] ss:$48 sps:$4 sm:$0xff]   ;;  %v4475_v17 = vld [vmem:[#allocation6 + $0xa20] ss:$16 sps:$4 sm:$0xff]   ;;  %v4478_v18 = vld [vmem:[#allocation6 + $0xa28] ss:$16 sps:$4 sm:$0xff]  }
 0x167   :  { %2659 = vmatpush1.bf16.msra.mxu0 %v4382_v19  ;;  %2917 = vmatpush1.bf16.msra.mxu1 %v4385_v20  ;;  %v4483_v19 = vld [vmem:[#allocation6 + $0xa44] ss:$16 sps:$4 sm:$0xff]   ;;  %v4486_v20 = vld [vmem:[#allocation6 + $0xa4c] ss:$16 sps:$4 sm:$0xff]  }
 0x168   :  { %2660 = vmatprep.subr.bf16.mxu0 %v4390_v21  ;;  %2918 = vmatprep.subr.bf16.mxu1 %v4393_v22  ;;  %v4481_v21 = vld [vmem:[#allocation6 + $0xa40] ss:$16 sps:$4 sm:$0xff]   ;;  %v4484_v22 = vld [vmem:[#allocation6 + $0xa48] ss:$16 sps:$4 sm:$0xff]  }
 0x16b   :  { %2661 = vmatpush1.bf16.msra.mxu0 %v4388_v23  ;;  %2919 = vmatpush1.bf16.msra.mxu1 %v4391_v24  ;;  %v4489_v23 = vld [vmem:[#allocation6 + $0xa64] ss:$16 sps:$4 sm:$0xff]   ;;  %v4492_v24 = vld [vmem:[#allocation6 + $0xa6c] ss:$16 sps:$4 sm:$0xff]  }
 0x16c   :  { %2662 = vmatprep.subr.bf16.mxu0 %v4396_v25  ;;  %2920 = vmatprep.subr.bf16.mxu1 %v4399_v26  ;;  %v4487_v25 = vld [vmem:[#allocation6 + $0xa60] ss:$16 sps:$4 sm:$0xff]   ;;  %v4490_v26 = vld [vmem:[#allocation6 + $0xa68] ss:$16 sps:$4 sm:$0xff]  }
 0x16f   :  { %2663 = vmatpush1.bf16.msra.mxu0 %v4394_v27  ;;  %2921 = vmatpush1.bf16.msra.mxu1 %v4397_v28  ;;  %v4495_v27 = vld [vmem:[#allocation6 + $0xa84] ss:$16 sps:$4 sm:$0xff]   ;;  %v4498_v28 = vld [vmem:[#allocation6 + $0xa8c] ss:$16 sps:$4 sm:$0xff]  }
 0x170   :  { %2664 = vmatprep.subr.bf16.mxu0 %v4402_v29  ;;  %2922 = vmatprep.subr.bf16.mxu1 %v4405_v30  ;;  %v4493_v29 = vld [vmem:[#allocation6 + $0xa80] ss:$16 sps:$4 sm:$0xff]   ;;  %v4496_v30 = vld [vmem:[#allocation6 + $0xa88] ss:$16 sps:$4 sm:$0xff]  }
 0x173   :  { %2665 = vmatpush1.bf16.msra.mxu0 %v4400_v31  ;;  %2923 = vmatpush1.bf16.msra.mxu1 %v4403_v32  ;;  %v4501_v31 = vld [vmem:[#allocation6 + $0xaa4] ss:$16 sps:$4 sm:$0xff]   ;;  %v4504_v32 = vld [vmem:[#allocation6 + $0xaac] ss:$16 sps:$4 sm:$0xff]  }
 0x174   :  { %2666 = vmatprep.subr.bf16.mxu0 %v4408_v33  ;;  %2924 = vmatprep.subr.bf16.mxu1 %v4411_v34  ;;  %v4499_v33 = vld [vmem:[#allocation6 + $0xaa0] ss:$16 sps:$4 sm:$0xff]   ;;  %v4502_v34 = vld [vmem:[#allocation6 + $0xaa8] ss:$16 sps:$4 sm:$0xff]  }
 0x177   :  { %2667 = vmatpush1.bf16.msra.mxu0 %v4406_v35  ;;  %2925 = vmatpush1.bf16.msra.mxu1 %v4409_v36  ;;  %v4507_v35 = vld [vmem:[#allocation6 + $0xac4] ss:$16 sps:$4 sm:$0xff]   ;;  %v4510_v36 = vld [vmem:[#allocation6 + $0xacc] ss:$16 sps:$4 sm:$0xff]  }
 0x178   :  { %2668 = vmatprep.subr.bf16.mxu0 %v4414_v37  ;;  %2926 = vmatprep.subr.bf16.mxu1 %v4417_v38  ;;  %v4505_v37 = vld [vmem:[#allocation6 + $0xac0] ss:$16 sps:$4 sm:$0xff]   ;;  %v4508_v38 = vld [vmem:[#allocation6 + $0xac8] ss:$16 sps:$4 sm:$0xff]  }
 0x17b   :  { %2669 = vmatpush1.bf16.msra.mxu0 %v4412_v39  ;;  %2927 = vmatpush1.bf16.msra.mxu1 %v4415_v40  ;;  %v4513_v39 = vld [vmem:[#allocation6 + $0xae4] ss:$16 sps:$4 sm:$0xff]   ;;  %v4516_v40 = vld [vmem:[#allocation6 + $0xaec] ss:$16 sps:$4 sm:$0xff]  }
 0x17c   :  { %2670 = vmatprep.subr.bf16.mxu0 %v4420_v41  ;;  %2928 = vmatprep.subr.bf16.mxu1 %v4423_v42  ;;  %v4511_v41 = vld [vmem:[#allocation6 + $0xae0] ss:$16 sps:$4 sm:$0xff]   ;;  %v4514_v42 = vld [vmem:[#allocation6 + $0xae8] ss:$16 sps:$4 sm:$0xff]  }
 0x17f   :  { %2671 = vmatpush1.bf16.msra.mxu0 %v4418_v43  ;;  %2929 = vmatpush1.bf16.msra.mxu1 %v4421_v44  ;;  %v4519_v43 = vld [vmem:[#allocation6 + $0xb04] ss:$16 sps:$4 sm:$0xff]   ;;  %v4522_v44 = vld [vmem:[#allocation6 + $0xb0c] ss:$16 sps:$4 sm:$0xff]  }
 0x180   :  { %2672 = vmatprep.subr.bf16.mxu0 %v4426_v45  ;;  %2930 = vmatprep.subr.bf16.mxu1 %v4429_v46  ;;  %v4517_v45 = vld [vmem:[#allocation6 + $0xb00] ss:$16 sps:$4 sm:$0xff]   ;;  %v4520_v46 = vld [vmem:[#allocation6 + $0xb08] ss:$16 sps:$4 sm:$0xff]  }
 0x183   :  { %2673 = vmatpush1.bf16.msra.mxu0 %v4424_v47  ;;  %2931 = vmatpush1.bf16.msra.mxu1 %v4427_v48  ;;  %v4525_v47 = vld [vmem:[#allocation6 + $0xb24] ss:$16 sps:$4 sm:$0xff]   ;;  %v4528_v48 = vld [vmem:[#allocation6 + $0xb2c] ss:$16 sps:$4 sm:$0xff]  }
 0x184   :  { %2674 = vmatprep.subr.bf16.mxu0 %v4432_v49  ;;  %2932 = vmatprep.subr.bf16.mxu1 %v4435_v50  ;;  %v4523_v49 = vld [vmem:[#allocation6 + $0xb20] ss:$16 sps:$4 sm:$0xff]   ;;  %v4526_v50 = vld [vmem:[#allocation6 + $0xb28] ss:$16 sps:$4 sm:$0xff]  }
 0x187   :  { %2675 = vmatpush1.bf16.msra.mxu0 %v4430_v51  ;;  %2933 = vmatpush1.bf16.msra.mxu1 %v4433_v52  ;;  %v4531_v51 = vld [vmem:[#allocation6 + $0xb44] ss:$16 sps:$4 sm:$0xff]   ;;  %v4534_v52 = vld [vmem:[#allocation6 + $0xb4c] ss:$16 sps:$4 sm:$0xff]  }
 0x188   :  { %2676 = vmatprep.subr.bf16.mxu0 %v4438_v53  ;;  %2934 = vmatprep.subr.bf16.mxu1 %v4441_v54  ;;  %v4529_v53 = vld [vmem:[#allocation6 + $0xb40] ss:$16 sps:$4 sm:$0xff]   ;;  %v4532_v54 = vld [vmem:[#allocation6 + $0xb48] ss:$16 sps:$4 sm:$0xff]  }
 0x18b   :  { %2677 = vmatpush1.bf16.msra.mxu0 %v4436_v55  ;;  %2935 = vmatpush1.bf16.msra.mxu1 %v4439_v56  ;;  %v4537_v55 = vld [vmem:[#allocation6 + $0xb64] ss:$16 sps:$4 sm:$0xff]   ;;  %v4540_v56 = vld [vmem:[#allocation6 + $0xb6c] ss:$16 sps:$4 sm:$0xff]  }
 0x18c   :  { %2678 = vmatprep.subr.bf16.mxu0 %v4444_v57  ;;  %2936 = vmatprep.subr.bf16.mxu1 %v4447_v58  ;;  %v4535_v57 = vld [vmem:[#allocation6 + $0xb60] ss:$16 sps:$4 sm:$0xff]   ;;  %v4538_v58 = vld [vmem:[#allocation6 + $0xb68] ss:$16 sps:$4 sm:$0xff]  }
 0x18f   :  { %2679 = vmatpush1.bf16.msra.mxu0 %v4442_v59  ;;  %2937 = vmatpush1.bf16.msra.mxu1 %v4445_v60  ;;  %v4543_v59 = vld [vmem:[#allocation6 + $0xb84] ss:$16 sps:$4 sm:$0xff]   ;;  %v4546_v60 = vld [vmem:[#allocation6 + $0xb8c] ss:$16 sps:$4 sm:$0xff]  }
 0x190   :  { %2680 = vmatprep.subr.bf16.mxu0 %v4450_v61  ;;  %2938 = vmatprep.subr.bf16.mxu1 %v4453_v62  ;;  %v4541_v61 = vld [vmem:[#allocation6 + $0xb80] ss:$16 sps:$4 sm:$0xff]   ;;  %v4544_v62 = vld [vmem:[#allocation6 + $0xb88] ss:$16 sps:$4 sm:$0xff]  }
 0x193   :  { %2681 = vmatpush1.bf16.msra.mxu0 %v4448_v63  ;;  %2939 = vmatpush1.bf16.msra.mxu1 %v4451_v0  ;;  %v4549_v63 = vld [vmem:[#allocation6 + $0xba4] ss:$16 sps:$4 sm:$0xff]   ;;  %v4552_v0 = vld [vmem:[#allocation6 + $0xbac] ss:$16 sps:$4 sm:$0xff]  }
 0x194   :  { %2682 = vmatprep.subr.bf16.mxu0 %v4456_v1  ;;  %2940 = vmatprep.subr.bf16.mxu1 %v4459_v2  ;;  %v4547_v1 = vld [vmem:[#allocation6 + $0xba0] ss:$16 sps:$4 sm:$0xff]   ;;  %v4550_v2 = vld [vmem:[#allocation6 + $0xba8] ss:$16 sps:$4 sm:$0xff]  }
 0x197   :  { %2683 = vmatpush1.bf16.msra.mxu0 %v4454_v3  ;;  %2941 = vmatpush1.bf16.msra.mxu1 %v4457_v4  ;;  %v4555_v3 = vld [vmem:[#allocation6 + $0xbc4] ss:$16 sps:$4 sm:$0xff]   ;;  %v4558_v4 = vld [vmem:[#allocation6 + $0xbcc] ss:$16 sps:$4 sm:$0xff]  }
 0x198   :  { %2684 = vmatprep.subr.bf16.mxu0 %v4462_v5  ;;  %2942 = vmatprep.subr.bf16.mxu1 %v4465_v6  ;;  %v4553_v5 = vld [vmem:[#allocation6 + $0xbc0] ss:$16 sps:$4 sm:$0xff]   ;;  %v4556_v6 = vld [vmem:[#allocation6 + $0xbc8] ss:$16 sps:$4 sm:$0xff]  }
 0x19b   :  { %2685 = vmatpush1.bf16.msra.mxu0 %v4460_v7  ;;  %2943 = vmatpush1.bf16.msra.mxu1 %v4463_v8  ;;  %v4561_v7 = vld [vmem:[#allocation6 + $0xbe4] ss:$16 sps:$4 sm:$0xff]   ;;  %v4564_v8 = vld [vmem:[#allocation6 + $0xbec] ss:$16 sps:$4 sm:$0xff]  }
 0x19c   :  { %2697 = vmatprep.subr.bf16.mxu0 %v4471_v9  ;;  %2955 = vmatprep.subr.bf16.mxu1 %v4474_v10  ;;  %v4559_v9 = vld [vmem:[#allocation6 + $0xbe0] ss:$16 sps:$4 sm:$0xff]   ;;  %v4562_v10 = vld [vmem:[#allocation6 + $0xbe8] ss:$16 sps:$4 sm:$0xff]  }
 0x19e   :  { %2687 = vmatmul.mubr.bf16.vlgmr.msra.gmra.mrb[0].mxu0 %v4466_v11  ;;  %2945 = vmatmul.mubr.bf16.vlgmr.msra.gmra.mrb[0].mxu1 %v4466_v11  ;;  %v4568_v11 = vld [vmem:[#allocation8 + $0x40] sm:$0xff]  }
 0x19f   :  { %2698 = vmatpush1.bf16.msra.mxu0 %v4469_v12  ;;  %2956 = vmatpush1.bf16.msra.mxu1 %v4472_v13  ;;  %v4569_v12 = vld [vmem:[#allocation8 + $0xc0] sm:$0xff]   ;;  %v4565_v13 = vld [vmem:[#allocation3 + $0x28] ss:$48 sps:$4 sm:$0xff]  }
 0x1a0   :  { %2699 = vmatprep.subr.bf16.mxu0 %v4477_v14  ;;  %2957 = vmatprep.subr.bf16.mxu1 %v4480_v15  ;;  %v4570_v14 = vld [vmem:[#allocation8] sm:$0xff]  }
 0x1a1   :  { %2729 = vmatprep.mubr.bf16.mxu0 %v4567_v16  ;;  %2987 = vmatprep.mubr.bf16.mxu1 %v4567_v16  ;;  %v4571_v15 = vld [vmem:[#allocation8 + $0x80] sm:$0xff]   ;;  %v4572_v16 = vld [vmem:[#allocation8 + $0x48] sm:$0xff]  }
 0x1a3   :  { %2700 = vmatpush1.bf16.msra.mxu0 %v4475_v17  ;;  %2958 = vmatpush1.bf16.msra.mxu1 %v4478_v18  ;;  %v4573_v17 = vld [vmem:[#allocation8 + $0xc8] sm:$0xff]  }
 0x1a4   :  { %2701 = vmatprep.subr.bf16.mxu0 %v4483_v19  ;;  %2959 = vmatprep.subr.bf16.mxu1 %v4486_v20  ;;  %v4574_v18 = vld [vmem:[#allocation8 + $0x8] sm:$0xff]   ;;  %v4576_v20 = vld [vmem:[#allocation8 + $0x50] sm:$0xff]  }
 0x1a5   :  { %v4575_v19 = vld [vmem:[#allocation8 + $0x88] sm:$0xff]  }
 0x1a7   :  { %2702 = vmatpush1.bf16.msra.mxu0 %v4481_v21  ;;  %2960 = vmatpush1.bf16.msra.mxu1 %v4484_v22  ;;  %v4577_v21 = vld [vmem:[#allocation8 + $0xd0] sm:$0xff]  }
 0x1a8   :  { %2703 = vmatprep.subr.bf16.mxu0 %v4489_v23  ;;  %2961 = vmatprep.subr.bf16.mxu1 %v4492_v24  ;;  %v4578_v22 = vld [vmem:[#allocation8 + $0x10] sm:$0xff]   ;;  %v4580_v24 = vld [vmem:[#allocation8 + $0x58] sm:$0xff]  }
 0x1a9   :  { %v4579_v23 = vld [vmem:[#allocation8 + $0x90] sm:$0xff]  }
 0x1ab   :  { %2704 = vmatpush1.bf16.msra.mxu0 %v4487_v25  ;;  %2962 = vmatpush1.bf16.msra.mxu1 %v4490_v26  ;;  %v4581_v25 = vld [vmem:[#allocation8 + $0xd8] sm:$0xff]  }
 0x1ac   :  { %2705 = vmatprep.subr.bf16.mxu0 %v4495_v27  ;;  %2963 = vmatprep.subr.bf16.mxu1 %v4498_v28  ;;  %v4582_v26 = vld [vmem:[#allocation8 + $0x18] sm:$0xff]   ;;  %v4584_v28 = vld [vmem:[#allocation8 + $0x60] sm:$0xff]  }
 0x1ad   :  { %v4583_v27 = vld [vmem:[#allocation8 + $0x98] sm:$0xff]  }
 0x1af   :  { %2706 = vmatpush1.bf16.msra.mxu0 %v4493_v29  ;;  %2964 = vmatpush1.bf16.msra.mxu1 %v4496_v30  ;;  %v4585_v29 = vld [vmem:[#allocation8 + $0xe0] sm:$0xff]  }
 0x1b0   :  { %2707 = vmatprep.subr.bf16.mxu0 %v4501_v31  ;;  %2965 = vmatprep.subr.bf16.mxu1 %v4504_v32  ;;  %v4586_v30 = vld [vmem:[#allocation8 + $0x20] sm:$0xff]   ;;  %v4588_v32 = vld [vmem:[#allocation8 + $0x68] sm:$0xff]  }
 0x1b1   :  { %v4587_v31 = vld [vmem:[#allocation8 + $0xa0] sm:$0xff]  }
 0x1b3   :  { %2708 = vmatpush1.bf16.msra.mxu0 %v4499_v33  ;;  %2966 = vmatpush1.bf16.msra.mxu1 %v4502_v34  ;;  %v4589_v33 = vld [vmem:[#allocation8 + $0xe8] sm:$0xff]  }
 0x1b4   :  { %2709 = vmatprep.subr.bf16.mxu0 %v4507_v35  ;;  %2967 = vmatprep.subr.bf16.mxu1 %v4510_v36  ;;  %v4590_v34 = vld [vmem:[#allocation8 + $0x28] sm:$0xff]   ;;  %v4592_v36 = vld [vmem:[#allocation8 + $0x70] sm:$0xff]  }
 0x1b5   :  { %v4591_v35 = vld [vmem:[#allocation8 + $0xa8] sm:$0xff]  }
 0x1b7   :  { %2710 = vmatpush1.bf16.msra.mxu0 %v4505_v37  ;;  %2968 = vmatpush1.bf16.msra.mxu1 %v4508_v38  ;;  %v4593_v37 = vld [vmem:[#allocation8 + $0xf0] sm:$0xff]  }
 0x1b8   :  { %2711 = vmatprep.subr.bf16.mxu0 %v4513_v39  ;;  %2969 = vmatprep.subr.bf16.mxu1 %v4516_v40  ;;  %v4594_v38 = vld [vmem:[#allocation8 + $0x30] sm:$0xff]   ;;  %v4596_v40 = vld [vmem:[#allocation8 + $0x78] sm:$0xff]  }
 0x1b9   :  { %v4595_v39 = vld [vmem:[#allocation8 + $0xb0] sm:$0xff]  }
 0x1bb   :  { %2712 = vmatpush1.bf16.msra.mxu0 %v4511_v41  ;;  %2970 = vmatpush1.bf16.msra.mxu1 %v4514_v42  ;;  %v4597_v41 = vld [vmem:[#allocation8 + $0xf8] sm:$0xff]  }
 0x1bc   :  { %2713 = vmatprep.subr.bf16.mxu0 %v4519_v43  ;;  %2971 = vmatprep.subr.bf16.mxu1 %v4522_v44  ;;  %v4598_v42 = vld [vmem:[#allocation8 + $0x38] sm:$0xff]  }
 0x1bd   :  { %v4599_v43 = vld [vmem:[#allocation8 + $0xb8] sm:$0xff]  }
 0x1bf   :  { %2714 = vmatpush1.bf16.msra.mxu0 %v4517_v45  ;;  %2972 = vmatpush1.bf16.msra.mxu1 %v4520_v46 }
 0x1c0   :  { %2715 = vmatprep.subr.bf16.mxu0 %v4525_v47  ;;  %2973 = vmatprep.subr.bf16.mxu1 %v4528_v48 }
 0x1c3   :  { %2716 = vmatpush1.bf16.msra.mxu0 %v4523_v49  ;;  %2974 = vmatpush1.bf16.msra.mxu1 %v4526_v50 }
 0x1c4   :  { %2717 = vmatprep.subr.bf16.mxu0 %v4531_v51  ;;  %2975 = vmatprep.subr.bf16.mxu1 %v4534_v52 }
 0x1c7   :  { %2718 = vmatpush1.bf16.msra.mxu0 %v4529_v53  ;;  %2976 = vmatpush1.bf16.msra.mxu1 %v4532_v54 }
 0x1c8   :  { %2719 = vmatprep.subr.bf16.mxu0 %v4537_v55  ;;  %2977 = vmatprep.subr.bf16.mxu1 %v4540_v56  ;;  %v3367_v56 = vlaneseq }
 0x1cb   :  { %2720 = vmatpush1.bf16.msra.mxu0 %v4535_v57  ;;  %2978 = vmatpush1.bf16.msra.mxu1 %v4538_v58  ;;  %v3368_v57 = vshrl.u32 %v3367_v56, 7 }
 0x1cc   :  { %2721 = vmatprep.subr.bf16.mxu0 %v4543_v59  ;;  %2979 = vmatprep.subr.bf16.mxu1 %v4546_v60 }
 0x1cd   :  { %vm3370_vm0 = vcmp.lt.s32.totalorder %v3368_v57, 6 }
 0x1cf   :  { %2722 = vmatpush1.bf16.msra.mxu0 %v4541_v61  ;;  %2980 = vmatpush1.bf16.msra.mxu1 %v4544_v62 }
 0x1d0   :  { %2723 = vmatprep.subr.bf16.mxu0 %v4549_v63  ;;  %2981 = vmatprep.subr.bf16.mxu1 %v4552_v0 }
 0x1d3   :  { %2724 = vmatpush1.bf16.msra.mxu0 %v4547_v1  ;;  %2982 = vmatpush1.bf16.msra.mxu1 %v4550_v2 }
 0x1d4   :  { %2725 = vmatprep.subr.bf16.mxu0 %v4555_v3  ;;  %2983 = vmatprep.subr.bf16.mxu1 %v4558_v4 }
 0x1d7   :  { %2726 = vmatpush1.bf16.msra.mxu0 %v4553_v5  ;;  %2984 = vmatpush1.bf16.msra.mxu1 %v4556_v6 }
 0x1d8   :  { %2727 = vmatprep.subr.bf16.mxu0 %v4561_v7  ;;  %2985 = vmatprep.subr.bf16.mxu1 %v4564_v8  ;;  %v4753_v7 = vmov 0.0  }
 0x1d9   :  { %v3874_v8 = vsel %vm3370_vm0, 1.0, %v4753_v7 }
 0x1db   :  { %2728 = vmatpush1.bf16.msra.mxu0 %v4559_v9  ;;  %2986 = vmatpush1.bf16.msra.mxu1 %v4562_v10 }
 0x1dc   :  { %3875 = vmatprep.subr.bf16.mxu0 %v4568_v11  ;;  %3897 = vmatprep.subr.bf16.mxu1 %v4569_v12 }
 0x1de   :  { %2730 = vmatmul.mubr.bf16.vlgmr.msra.gmra.mrb[0].mxu0 %v4565_v13  ;;  %2988 = vmatmul.mubr.bf16.vlgmr.msra.gmra.mrb[0].mxu1 %v4565_v13 }
 0x1df   :  { %3876 = vmatpush3.bf16.msra.mxu0 %v4570_v14  ;;  %3898 = vmatpush3.bf16.msra.mxu1 %v4571_v15 }
 0x1e0   :  { %3877 = vmatprep.subr.bf16.mxu0 %v4572_v16  ;;  %3899 = vmatprep.subr.bf16.mxu1 %v4573_v17 }
 0x1e3   :  { %3878 = vmatpush3.bf16.msra.mxu0 %v4574_v18  ;;  %3900 = vmatpush3.bf16.msra.mxu1 %v4575_v19 }
 0x1e4   :  { %3879 = vmatprep.subr.bf16.mxu0 %v4576_v20  ;;  %3901 = vmatprep.subr.bf16.mxu1 %v4577_v21 }
 0x1e7   :  { %3880 = vmatpush3.bf16.msra.mxu0 %v4578_v22  ;;  %3902 = vmatpush3.bf16.msra.mxu1 %v4579_v23 }
 0x1e8   :  { %3881 = vmatprep.subr.bf16.mxu0 %v4580_v24  ;;  %3903 = vmatprep.subr.bf16.mxu1 %v4581_v25 }
 0x1eb   :  { %3882 = vmatpush3.bf16.msra.mxu0 %v4582_v26  ;;  %3904 = vmatpush3.bf16.msra.mxu1 %v4583_v27 }
 0x1ec   :  { %3883 = vmatprep.subr.bf16.mxu0 %v4584_v28  ;;  %3905 = vmatprep.subr.bf16.mxu1 %v4585_v29 }
 0x1ef   :  { %3884 = vmatpush3.bf16.msra.mxu0 %v4586_v30  ;;  %3906 = vmatpush3.bf16.msra.mxu1 %v4587_v31 }
 0x1f0   :  { %3885 = vmatprep.subr.bf16.mxu0 %v4588_v32  ;;  %3907 = vmatprep.subr.bf16.mxu1 %v4589_v33 }
 0x1f3   :  { %3886 = vmatpush3.bf16.msra.mxu0 %v4590_v34  ;;  %3908 = vmatpush3.bf16.msra.mxu1 %v4591_v35  ;;  %v3400_v35 = vld [vmem:[#allocation9] sm:$0x1] }
 0x1f4   :  { %3887 = vmatprep.subr.bf16.mxu0 %v4592_v36  ;;  %3909 = vmatprep.subr.bf16.mxu1 %v4593_v37  ;;  %v3410_v36 = vsub.s32 0, %v3368_v57 }
 0x1f7   :  { %3888 = vmatpush3.bf16.msra.mxu0 %v4594_v38  ;;  %3910 = vmatpush3.bf16.msra.mxu1 %v4595_v39  ;;  %v3404_v39 = vld [vmem:[#allocation11] sm:$0x1] }
 0x1f8   :  { %3889 = vmatprep.subr.bf16.mxu0 %v4596_v40  ;;  %3911 = vmatprep.subr.bf16.mxu1 %v4597_v41 }
 0x1fb   :  { %3890 = vmatpush3.bf16.msra.mxu0 %v4598_v42  ;;  %3912 = vmatpush3.bf16.msra.mxu1 %v4599_v43 }
 0x2b1   :  { %v2731_v44 = vpop.f32.mrb[0].mxu0  ;;  %v2989_v45 = vpop.f32.mrb[0].mxu1 }
 0x2b2   :  { %v2733_v46 = vpop.f32.mrb[1].mxu0  ;;  %v2991_v47 = vpop.f32.mrb[1].mxu1 }
 0x2b3   :  { %v2735_v48 = vpop.f32.mrb[2].mxu0  ;;  %v2993_v49 = vpop.f32.mrb[2].mxu1 }
 0x2b4   :  { %v3025_v50 = vpack.c.bf16 %v2735_v48, %v2731_v44  ;;  %v3027_v51 = vpack.c.bf16 %v2993_v49, %v2989_v45  ;;  %v2737_v52 = vpop.f32.mrb[3].mxu0  ;;  %v2995_v53 = vpop.f32.mrb[3].mxu1 }
 0x2b5   :  { %v3026_v54 = vpack.c.bf16 %v2737_v52, %v2733_v46  ;;  %v3028_v55 = vpack.c.bf16 %v2995_v53, %v2991_v47 }
 0x2b7   :  { %3317 = vmatprep.mubr.bf16.mxu0 %v3026_v54  ;;  %3358 = vmatprep.mubr.bf16.mxu1 %v3028_v55 }
 0x2b8   :  { %3318 = vmatmul.mubr.bf16.vlgmr.msra.gmra.mrb[4].mxu0 %v3025_v50  ;;  %3359 = vmatmul.mubr.bf16.vlgmr.msra.gmra.mrb[4].mxu1 %v3027_v51 }
 0x38b   :  { %v3891_v58 = vpop.f32.mrb[4].mxu0  ;;  %v3913_v59 = vpop.f32.mrb[4].mxu1 }
 0x38c   :  { %v3892_v60 = vpop.f32.mrb[5].mxu0  ;;  %v3914_v61 = vpop.f32.mrb[5].mxu1 }
 0x38d   :  { %v3893_v62 = vadd.f32 %v3892_v60, %v3891_v58  ;;  %v3915_v63 = vadd.f32 %v3914_v61, %v3913_v59  ;;  %v3894_v0 = vpop.f32.mrb[6].mxu0  ;;  %v3916_v1 = vpop.f32.mrb[6].mxu1 }
 0x38e   :  { %v3895_v2 = vpop.f32.mrb[7].mxu0  ;;  %v3917_v3 = vpop.f32.mrb[7].mxu1 }
 0x38f   :  { %v3361_v4 = vadd.f32 %v3915_v63, %v3893_v62  ;;  %v3896_v5 = vadd.f32 %v3895_v2, %v3894_v0  ;;  %v3918_v6 = vadd.f32 %v3917_v3, %v3916_v1 }
 0x391   :  { %v3364_v9 = vadd.f32 %v3918_v6, %v3896_v5  ;;  %v3376_v10 = vmul.f32 %v3874_v8, %v3361_v4 }
 0x393   :  { %v3377_v11 = vmul.f32 0.0, %v3364_v9 }
 0x395   :  { %v3378_v12 = vadd.f32 %v3377_v11, %v3376_v10 }
 0x397   :  { %v3379_v13 = vrot.slane %v3378_v12, 4 }
 0x399   :  { %v3380_v14 = vadd.f32 %v3379_v13, %v3378_v12 }
 0x39b   :  { %v3381_v15 = vrot.slane %v3380_v14, 2 }
 0x39d   :  { %v3382_v16 = vadd.f32 %v3381_v15, %v3380_v14 }
 0x39f   :  { %v3383_v17 = vrot.slane %v3382_v16, 1 }
 0x3a1   :  { %v3384_v18 = vadd.f32 %v3383_v17, %v3382_v16 }
 0x3a3   :  { %v3385_v19 = vmul.f32 0.16666667, %v3384_v18 }
 0x3a5   :  { %v3386_v20 = vsub.f32 %v3361_v4, %v3385_v19  ;;  %v3387_v21 = vsub.f32 %v3364_v9, %v3385_v19 }
 0x3a7   :  { %v3388_v22 = vmul.f32 %v3874_v8, %v3386_v20  ;;  %v3389_v23 = vmul.f32 0.0, %v3387_v21 }
 0x3a9   :  { %v3390_v24 = vmul.f32 %v3388_v22, %v3388_v22  ;;  %v3391_v25 = vmul.f32 %v3389_v23, %v3389_v23 }
 0x3ab   :  { %v3392_v26 = vadd.f32 %v3391_v25, %v3390_v24 }
 0x3ad   :  { %v3393_v27 = vrot.slane %v3392_v26, 4 }
 0x3af   :  { %v3394_v28 = vadd.f32 %v3393_v27, %v3392_v26 }
 0x3b1   :  { %v3395_v29 = vrot.slane %v3394_v28, 2 }
 0x3b3   :  { %v3396_v30 = vadd.f32 %v3395_v29, %v3394_v28 }
 0x3b5   :  { %v3397_v31 = vrot.slane %v3396_v30, 1 }
 0x3b7   :  { %v3398_v32 = vadd.f32 %v3397_v31, %v3396_v30 }
 0x3b9   :  { %v3399_v33 = vmul.f32 0.16666667, %v3398_v32 }
 0x3bb   :  { %v3401_v34 = vadd.f32 1e-05, %v3399_v33 }
 0x3bd   :  { %4600 = vrsqrt.f32 %v3401_v34 }
 0x3c7   :  { %v4601_v37 = vpop.eup %4600 }
 0x3c8   :  { %v3403_v38 = vmul.f32 %v4601_v37, %v3400_v35 }
 0x3ca   :  { %v3405_v40 = vmul.f32 %v3403_v38, %v3385_v19  ;;  %v3411_v41 = vrot.slane %v3403_v38, %v3410_v36 }
 0x3cc   :  { %v3406_v42 = vsub.f32 %v3404_v39, %v3405_v40  ;;  %v3413_v43 = vmul.f32 %v3411_v41, %v3361_v4  ;;  %v3414_v44 = vmul.f32 %v3411_v41, %v3364_v9 }
 0x3ce   :  { %v3419_v45 = vrot.slane %v3406_v42, %v3410_v36 }
 0x3d0   :  { %v3422_v46 = vadd.f32 %v3419_v45, %v3414_v44  ;;  %v3421_v47 = vadd.f32 %v3419_v45, %v3413_v43 }
 0x3d2   :  { %v3424_v48 = vmax.f32 %v3422_v46, 0.0  ;;  %v3423_v49 = vmax.f32 %v3421_v47, 0.0 }
 0x3d4   :  { %3426 = vst [vmem:[#allocation12 + $0x8] sm:$0xff] %v3424_v48  ;;  %3425 = vst [vmem:[#allocation12] sm:$0xff] %v3423_v49 }
 0x3d5   :  { %4723 = shalt.err (!%p4720_p2)
}
 0x3d6   :  { %s4724_s9 = scalar_lea.hbm %s4864_s5, 256 }
 0x3d7   :  { %p4725_p3 = scmp.ne.s32.totalorder %s4864_s5, %s4724_s9  ;;  %p4728_p4 = scmp.lt.u32.totalorder %s4724_s9, %s4864_s5 }
 0x3d9   :  { %p4730_p5 = pnand %p4728_p4, %p4725_p3 }
 0x3db   :  { %4733 = shalt.err (!%p4730_p5)
}
 0x3dc   :  { %s4755_s15 = smov 128   ;;  %s4756_s16 = smov 8  }
 0x3dd   :  { %3438 = dma.vmem_to_hbm [thread:$0]  %s3433_s30, 256, %s4864_s5, [#allocation5], %s4755_s15, %s4755_s15, %s4756_s16  }
 0x3de   :  { %4740 = dma.done.wait [#allocation5], 256  }
 0x3df   :  { %4741 = vsyncadd [#allocation5], 4294967040 }
 0x3e0   :  { %3442 = vsyncpa [#allocation4], 1 }
 0x3e1   :  { %3443 = vsyncpa [#allocation7], 1 }
 0x3e2   :  { %3444 = vsyncpa [#allocation10], 1 }
 0x3e3   :  { %3445 = vsyncpa [#allocation5], 1 }

</bundles_post_ra>
